<compile_context>
chip_gen: v7x
topology: tpu7x:2x2x1
jax: 0.10.0
libtpu: 0.0.40
codegen_flags: <defaults>
</compile_context>

<pallas_src>
import jax
import jax.numpy as jnp
from jax.experimental import pallas as pl
from jax.experimental.pallas import tpu as pltpu

ALPHA = 0.2        # LeakyReLU negative slope
LN_EPS = 1e-5      # nn.LayerNorm default eps
NEG_BIG = -9e15    # reference-only (kernel uses multiplicative masking)
HIGH = jax.lax.Precision.HIGHEST


def gat_fused_kernel(h_ref, adj_ref, rhs_ref, esrc_ref, iexp_ref, sel_ref,
                     hmask_ref, eout_ref, gamma_ref, beta_ref, out_ref):
    H = esrc_ref.shape[0]            # heads
    HF = gamma_ref.shape[1]          # H * F_out
    F = HF // H                      # per-head feature width
    N = adj_ref.shape[1]             # nodes

    def mm(a, b):                    # plain matmul, exact f32 on the MXU
        return jnp.dot(a, b, preferred_element_type=jnp.float32,
                       precision=HIGH)

    def mm_bt(a, b):                 # a @ b.T (contract last dims)
        return jax.lax.dot_general(a, b, (((1,), (1,)), ((), ())),
                                   preferred_element_type=jnp.float32,
                                   precision=HIGH)

    h = h_ref[0]                           # [N, F_in] f32
    adj = adj_ref[0].astype(jnp.float32)   # [N, N] 0/1 (bf16 on the wire)
    e_src = esrc_ref[...]                  # [H, H*N]  head -> key-block expander
    i_exp = iexp_ref[...]                  # [N, H*N]  H-fold tiled identity
    sel = sel_ref[...]                     # [H*N, N]  node replicator
    head_mask = hmask_ref[...]             # [H*N, HF] block-diagonal mask
    e_out = eout_ref[...]                  # [H, HF]   head -> feature-block expander

    # --- one fused projection matmul: [Wh | residual | Wh.a_src | Wh.a_dst] --
    P = mm(h, rhs_ref[...])                # [N, 2*HF + 2*H]
    wh = P[:, :HF]                         # [N, HF] per-head features (concat)
    res = P[:, HF:2 * HF]                  # [N, HF] residual projection
    src = P[:, 2 * HF:2 * HF + H]          # [N, H]  a_src . Wh_h[i]
    dstc = P[:, 2 * HF + H:2 * HF + 2 * H]   # [N, H]  a_dst . Wh_h[j]

    # --- attention logits for all heads at once, flat [N, H*N] lanes ---------
    # e[i, h*N+j] = src[i,h] + dstc[j,h]; broadcasts ride the MXU via 0/1
    # selector matmuls instead of per-head XLU lane-broadcasts.
    src_b = mm(src, e_src)                                        # [N, H*N]
    dst_b = mm(jnp.ones((N, N), jnp.float32), mm(dstc, e_src) * i_exp)
    e = src_b + dst_b
    e = jnp.where(e > 0, e, ALPHA * e)                            # LeakyReLU

    # --- masked softmax (multiplicative mask == the -9e15 path numerically) --
    # softmax is shift-invariant, so one per-row max across all heads suffices.
    adj_all = mm(adj, i_exp)                                      # [N, H*N]
    m = jnp.max(e, axis=-1, keepdims=True)
    p = jnp.exp(e - m) * adj_all                                  # unnormalized
    denom = mm_bt(p, e_src)                                       # [N, H]
    inv = pl.reciprocal(denom, approx=False)   # exact -> keeps 1e-4 tolerance
    # attention dropout(p=0.1) is identity in eval mode.
    # NOTE: rows with zero neighbors would give denom == 0 (adj ships with
    # self-loops, matching the reference's behaviour for connected rows).

    # --- aggregation of all heads in one block-diagonal matmul ---------------
    wh_bd = mm(sel, wh) * head_mask                               # [H*N, HF]
    agg = mm(p, wh_bd)                                            # [N, HF]
    hp = agg * mm(inv, e_out) + res          # normalize after agg + residual

    # --- ELU (concat=True); clamp exp arg so unselected branch stays finite --
    hp = jnp.where(hp > 0, hp, jnp.exp(jnp.minimum(hp, 0.0)) - 1.0)

    # --- per-head LayerNorm; stats via exact 0/1 matmuls, affine lane-dense --
    mu = mm_bt(hp, e_out) * (1.0 / F)                             # [N, H]
    xc = hp - mm(mu, e_out)
    var = mm_bt(xc * xc, e_out) * (1.0 / F)                       # [N, H]
    xn = xc * mm(jax.lax.rsqrt(var + LN_EPS), e_out)
    out = xn * gamma_ref[...] + beta_ref[...]

    # Single lane-dense (H*F_out-wide) store, already in concat layout.
    out_ref[0] = out.astype(out_ref.dtype)


@jax.jit
def multi_head_gat(h, adj, W, A, Wres, gamma, beta):
    """h: [B,N,F_in], adj: [B,N,N], W/Wres: [H,F_out,F_in] (torch Linear
    layout), A: [H,2,F_out], gamma/beta: [H,F_out].
    Returns [B, N, H*F_out] (merge='concat')."""
    B, N, F_in = h.shape
    H, F_out, _ = W.shape
    HF = H * F_out
    HN = H * N

    # ---- host-side packing (exact relayouts / VPU math, free plumbing) ------
    W_all = jnp.transpose(W, (2, 0, 1)).reshape(F_in, HF)     # [F_in, HF]
    Wres_all = jnp.transpose(Wres, (2, 0, 1)).reshape(F_in, HF)
    # fold the attention vectors through W:  (h @ W_h^T) . a_h == h @ Wa_h
    Wa1 = jnp.sum(W * A[:, 0, :, None], axis=1).T             # [F_in, H]
    Wa2 = jnp.sum(W * A[:, 1, :, None], axis=1).T             # [F_in, H]
    rhs = jnp.concatenate([W_all, Wres_all, Wa1, Wa2], axis=1)  # [F_in, 2HF+2H]

    gamma_cat = gamma.reshape(1, HF)
    beta_cat = beta.reshape(1, HF)

    # Constant 0/1 selector matrices (exact, so HIGHEST-precision matmuls on
    # them introduce no rounding); they let broadcasts/reductions ride the MXU.
    heads = jnp.arange(H)
    nodes = jnp.arange(N)
    cols_hn = jnp.arange(HN)
    cols_hf = jnp.arange(HF)
    e_src = (cols_hn[None, :] // N == heads[:, None]).astype(jnp.float32)
    i_exp = (cols_hn[None, :] % N == nodes[:, None]).astype(jnp.float32)
    sel = jnp.transpose(i_exp)                                  # [HN, N]
    head_mask = (cols_hn[:, None] // N ==
                 cols_hf[None, :] // F_out).astype(jnp.float32)  # [HN, HF]
    e_out = (cols_hf[None, :] // F_out == heads[:, None]).astype(jnp.float32)

    # Adjacency is only a 0/1 mask in-kernel: ship half the bytes.
    adj_mask = (adj > 0).astype(jnp.bfloat16)

    return pl.pallas_call(
        gat_fused_kernel,
        out_shape=jax.ShapeDtypeStruct((B, N, HF), jnp.float32),
        grid_spec=pltpu.PrefetchScalarGridSpec(
            num_scalar_prefetch=0,
            grid=(B,),
            in_specs=[
                pl.BlockSpec((1, N, F_in),           lambda b: (b, 0, 0)),
                pl.BlockSpec((1, N, N),              lambda b: (b, 0, 0)),
                pl.BlockSpec((F_in, 2 * HF + 2 * H), lambda b: (0, 0)),
                pl.BlockSpec((H, HN),                lambda b: (0, 0)),
                pl.BlockSpec((N, HN),                lambda b: (0, 0)),
                pl.BlockSpec((HN, N),                lambda b: (0, 0)),
                pl.BlockSpec((HN, HF),               lambda b: (0, 0)),
                pl.BlockSpec((H, HF),                lambda b: (0, 0)),
                pl.BlockSpec((1, HF),                lambda b: (0, 0)),
                pl.BlockSpec((1, HF),                lambda b: (0, 0)),
            ],
            out_specs=pl.BlockSpec((1, N, HF), lambda b: (b, 0, 0)),
        ),
        compiler_params=pltpu.CompilerParams(
            dimension_semantics=("parallel",)),
    )(h, adj_mask, rhs, e_src, i_exp, sel, head_mask, e_out,
      gamma_cat, beta_cat)


def multi_head_gat_ref(h, adj, W, A, Wres, gamma, beta):
    """Pure-JAX reference (mirrors the PyTorch forward in eval mode)."""
    outs = []
    for k in range(W.shape[0]):
        Wh = jnp.einsum('bnf,of->bno', h, W[k], precision=HIGH)
        f = jnp.einsum('bno,co->bnc', Wh, A[k], precision=HIGH)   # [B,N,2]
        e = f[:, :, 0:1] + f[:, :, 1:2].transpose(0, 2, 1)        # [B,N,N]
        e = jnp.where(e > 0, e, ALPHA * e)
        e = jnp.where(adj > 0, e, NEG_BIG)
        att = jax.nn.softmax(e, axis=-1)
        hp = jnp.einsum('bij,bjo->bio', att, Wh, precision=HIGH)
        hp = hp + jnp.einsum('bnf,of->bno', h, Wres[k], precision=HIGH)
        hp = jnp.where(hp > 0, hp, jnp.exp(jnp.minimum(hp, 0.0)) - 1.0)
        mu = jnp.mean(hp, axis=-1, keepdims=True)
        var = jnp.mean((hp - mu) ** 2, axis=-1, keepdims=True)
        hp = (hp - mu) * jax.lax.rsqrt(var + LN_EPS) * gamma[k] + beta[k]
        outs.append(hp)
    return jnp.concatenate(outs, axis=-1)


if __name__ == "__main__":
    B, N, F_in, F_out, H = 2, 16, 8, 32, 4   # H*F_out = 128 (lane-dense out)

    key = jax.random.PRNGKey(0)
    k_h, k_adj, k_w, k_a, k_r = jax.random.split(key, 5)

    h = jax.random.normal(k_h, (B, N, F_in), dtype=jnp.float32)
    adj = (jax.random.uniform(k_adj, (B, N, N)) > 0.5).astype(jnp.float32)
    adj = jnp.maximum(adj, jnp.eye(N, dtype=jnp.float32)[None])  # self-loops

    # Deterministic synthetic parameters (shapes from the module __init__):
    W = 0.2 * jax.random.normal(k_w, (H, F_out, F_in), dtype=jnp.float32)
    A = 0.2 * jax.random.normal(k_a, (H, 2, F_out), dtype=jnp.float32)
    Wres = 0.2 * jax.random.normal(k_r, (H, F_out, F_in), dtype=jnp.float32)
    gamma = jnp.ones((H, F_out), dtype=jnp.float32)   # nn.LayerNorm default
    beta = jnp.zeros((H, F_out), dtype=jnp.float32)

    out = jax.block_until_ready(multi_head_gat(h, adj, W, A, Wres, gamma, beta))
    ref = multi_head_gat_ref(h, adj, W, A, Wres, gamma, beta)

    assert out.shape == (B, N, H * F_out)
    assert jnp.allclose(out, ref, rtol=1e-4, atol=1e-4), float(
        jnp.max(jnp.abs(out - ref)))
    print("KERNEL_OK")
</pallas_src>

<mosaic_0001>
module attributes {stable_mosaic.version = 11 : i64} {
  func.func @gat_fused_kernel(%arg0: i32, %arg1: memref<1x16x8xf32, #tpu.memory_space<vmem>>, %arg2: memref<1x16x16xbf16, #tpu.memory_space<vmem>>, %arg3: memref<8x264xf32, #tpu.memory_space<vmem>>, %arg4: memref<4x64xf32, #tpu.memory_space<vmem>>, %arg5: memref<16x64xf32, #tpu.memory_space<vmem>>, %arg6: memref<64x16xf32, #tpu.memory_space<vmem>>, %arg7: memref<64x128xf32, #tpu.memory_space<vmem>>, %arg8: memref<4x128xf32, #tpu.memory_space<vmem>>, %arg9: memref<1x128xf32, #tpu.memory_space<vmem>>, %arg10: memref<1x128xf32, #tpu.memory_space<vmem>>, %arg11: memref<1x16x128xf32, #tpu.memory_space<vmem>>) attributes {dimension_semantics = [#tpu.dimension_semantics<parallel>], iteration_bounds = array<i64: 2>, scalar_prefetch = 0 : i64, scratch_operands = 0 : i64, tpu.core_type = #tpu.core_type<tc>, window_params = [{transform_indices = @transform_0, window_bounds = array<i64: 1, 16, 8>}, {transform_indices = @transform_1, window_bounds = array<i64: 1, 16, 16>}, {pipeline_mode = #tpu.pipeline_mode<synchronous>, transform_indices = @transform_2, window_bounds = array<i64: 8, 264>}, {pipeline_mode = #tpu.pipeline_mode<synchronous>, transform_indices = @transform_3, window_bounds = array<i64: 4, 64>}, {pipeline_mode = #tpu.pipeline_mode<synchronous>, transform_indices = @transform_4, window_bounds = array<i64: 16, 64>}, {pipeline_mode = #tpu.pipeline_mode<synchronous>, transform_indices = @transform_5, window_bounds = array<i64: 64, 16>}, {pipeline_mode = #tpu.pipeline_mode<synchronous>, transform_indices = @transform_6, window_bounds = array<i64: 64, 128>}, {pipeline_mode = #tpu.pipeline_mode<synchronous>, transform_indices = @transform_7, window_bounds = array<i64: 4, 128>}, {pipeline_mode = #tpu.pipeline_mode<synchronous>, transform_indices = @transform_8, window_bounds = array<i64: 1, 128>}, {pipeline_mode = #tpu.pipeline_mode<synchronous>, transform_indices = @transform_9, window_bounds = array<i64: 1, 128>}, {transform_indices = @transform_10, window_bounds = array<i64: 1, 16, 128>}]} {
    %c0 = arith.constant 0 : index
    %c0_0 = arith.constant 0 : index
    %c0_1 = arith.constant 0 : index
    %0 = vector.load %arg1[%c0, %c0_0, %c0_1] : memref<1x16x8xf32, #tpu.memory_space<vmem>>, vector<1x16x8xf32>
    %1 = vector.shape_cast %0 : vector<1x16x8xf32> to vector<16x8xf32>
    %c0_2 = arith.constant 0 : index
    %c0_3 = arith.constant 0 : index
    %c0_4 = arith.constant 0 : index
    %2 = vector.load %arg2[%c0_2, %c0_3, %c0_4] : memref<1x16x16xbf16, #tpu.memory_space<vmem>>, vector<1x16x16xbf16>
    %3 = vector.shape_cast %2 : vector<1x16x16xbf16> to vector<16x16xbf16>
    %4 = arith.extf %3 : vector<16x16xbf16> to vector<16x16xf32>
    %c0_5 = arith.constant 0 : index
    %c0_6 = arith.constant 0 : index
    %5 = vector.load %arg4[%c0_5, %c0_6] : memref<4x64xf32, #tpu.memory_space<vmem>>, vector<4x64xf32>
    %c0_7 = arith.constant 0 : index
    %c0_8 = arith.constant 0 : index
    %6 = vector.load %arg5[%c0_7, %c0_8] : memref<16x64xf32, #tpu.memory_space<vmem>>, vector<16x64xf32>
    %c0_9 = arith.constant 0 : index
    %c0_10 = arith.constant 0 : index
    %7 = vector.load %arg6[%c0_9, %c0_10] : memref<64x16xf32, #tpu.memory_space<vmem>>, vector<64x16xf32>
    %c0_11 = arith.constant 0 : index
    %c0_12 = arith.constant 0 : index
    %8 = vector.load %arg7[%c0_11, %c0_12] : memref<64x128xf32, #tpu.memory_space<vmem>>, vector<64x128xf32>
    %c0_13 = arith.constant 0 : index
    %c0_14 = arith.constant 0 : index
    %9 = vector.load %arg8[%c0_13, %c0_14] : memref<4x128xf32, #tpu.memory_space<vmem>>, vector<4x128xf32>
    %c0_15 = arith.constant 0 : index
    %c0_16 = arith.constant 0 : index
    %10 = vector.load %arg3[%c0_15, %c0_16] : memref<8x264xf32, #tpu.memory_space<vmem>>, vector<8x264xf32>
    %cst = arith.constant dense<0.000000e+00> : vector<16x264xf32>
    %11 = tpu.matmul %1, %10, %cst {dimension_numbers = #tpu.dot_dimension_numbers<[1], [0], [0], [1], [0, 0, 1, 1], [], []>, precision = #tpu.contract_precision<fp32>} : vector<16x8xf32>, vector<8x264xf32>, vector<16x264xf32> -> vector<16x264xf32>
    %12 = vector.extract_strided_slice %11 {offsets = [0, 0], sizes = [16, 128], strides = [1, 1]} : vector<16x264xf32> to vector<16x128xf32>
    %13 = vector.extract_strided_slice %11 {offsets = [0, 128], sizes = [16, 128], strides = [1, 1]} : vector<16x264xf32> to vector<16x128xf32>
    %14 = vector.extract_strided_slice %11 {offsets = [0, 256], sizes = [16, 4], strides = [1, 1]} : vector<16x264xf32> to vector<16x4xf32>
    %15 = vector.extract_strided_slice %11 {offsets = [0, 260], sizes = [16, 4], strides = [1, 1]} : vector<16x264xf32> to vector<16x4xf32>
    %cst_17 = arith.constant dense<0.000000e+00> : vector<16x64xf32>
    %16 = tpu.matmul %14, %5, %cst_17 {dimension_numbers = #tpu.dot_dimension_numbers<[1], [0], [0], [1], [0, 0, 1, 1], [], []>, precision = #tpu.contract_precision<fp32>} : vector<16x4xf32>, vector<4x64xf32>, vector<16x64xf32> -> vector<16x64xf32>
    %cst_18 = arith.constant 1.000000e+00 : f32
    %17 = vector.broadcast %cst_18 : f32 to vector<16x16xf32>
    %cst_19 = arith.constant dense<0.000000e+00> : vector<16x64xf32>
    %18 = tpu.matmul %15, %5, %cst_19 {dimension_numbers = #tpu.dot_dimension_numbers<[1], [0], [0], [1], [0, 0, 1, 1], [], []>, precision = #tpu.contract_precision<fp32>} : vector<16x4xf32>, vector<4x64xf32>, vector<16x64xf32> -> vector<16x64xf32>
    %19 = arith.mulf %18, %6 : vector<16x64xf32>
    %cst_20 = arith.constant dense<0.000000e+00> : vector<16x64xf32>
    %20 = tpu.matmul %17, %19, %cst_20 {dimension_numbers = #tpu.dot_dimension_numbers<[1], [0], [0], [1], [0, 0, 1, 1], [], []>, precision = #tpu.contract_precision<fp32>} : vector<16x16xf32>, vector<16x64xf32>, vector<16x64xf32> -> vector<16x64xf32>
    %21 = arith.addf %16, %20 : vector<16x64xf32>
    %cst_21 = arith.constant 0.000000e+00 : f32
    %22 = vector.broadcast %cst_21 : f32 to vector<16x64xf32>
    %23 = arith.cmpf ogt, %21, %22 : vector<16x64xf32>
    %cst_22 = arith.constant 2.000000e-01 : f32
    %24 = vector.broadcast %cst_22 : f32 to vector<16x64xf32>
    %25 = arith.mulf %24, %21 : vector<16x64xf32>
    %26 = arith.select %23, %21, %25 : vector<16x64xi1>, vector<16x64xf32>
    %cst_23 = arith.constant dense<0.000000e+00> : vector<16x64xf32>
    %27 = tpu.matmul %4, %6, %cst_23 {dimension_numbers = #tpu.dot_dimension_numbers<[1], [0], [0], [1], [0, 0, 1, 1], [], []>, precision = #tpu.contract_precision<fp32>} : vector<16x16xf32>, vector<16x64xf32>, vector<16x64xf32> -> vector<16x64xf32>
    %cst_24 = arith.constant dense<0xFF800000> : vector<16xf32>
    %28 = vector.multi_reduction <maximumf>, %26, %cst_24 [1] : vector<16x64xf32> to vector<16xf32>
    %29 = vector.shape_cast %28 : vector<16xf32> to vector<16x1xf32>
    %30 = vector.broadcast %29 : vector<16x1xf32> to vector<16x64xf32>
    %31 = arith.subf %26, %30 : vector<16x64xf32>
    %32 = math.exp %31 : vector<16x64xf32>
    %33 = arith.mulf %32, %27 : vector<16x64xf32>
    %cst_25 = arith.constant dense<0.000000e+00> : vector<16x4xf32>
    %34 = tpu.matmul %33, %5, %cst_25 {dimension_numbers = #tpu.dot_dimension_numbers<[1], [1], [0], [0], [0, 0, 1, 0], [], []>, precision = #tpu.contract_precision<fp32>} : vector<16x64xf32>, vector<4x64xf32>, vector<16x4xf32> -> vector<16x4xf32>
    %35 = tpu.reciprocal %34 : vector<16x4xf32> -> vector<16x4xf32>
    %cst_26 = arith.constant dense<0.000000e+00> : vector<64x128xf32>
    %36 = tpu.matmul %7, %12, %cst_26 {dimension_numbers = #tpu.dot_dimension_numbers<[1], [0], [0], [1], [0, 0, 1, 1], [], []>, precision = #tpu.contract_precision<fp32>} : vector<64x16xf32>, vector<16x128xf32>, vector<64x128xf32> -> vector<64x128xf32>
    %37 = arith.mulf %36, %8 : vector<64x128xf32>
    %cst_27 = arith.constant dense<0.000000e+00> : vector<16x128xf32>
    %38 = tpu.matmul %33, %37, %cst_27 {dimension_numbers = #tpu.dot_dimension_numbers<[1], [0], [0], [1], [0, 0, 1, 1], [], []>, precision = #tpu.contract_precision<fp32>} : vector<16x64xf32>, vector<64x128xf32>, vector<16x128xf32> -> vector<16x128xf32>
    %cst_28 = arith.constant dense<0.000000e+00> : vector<16x128xf32>
    %39 = tpu.matmul %35, %9, %cst_28 {dimension_numbers = #tpu.dot_dimension_numbers<[1], [0], [0], [1], [0, 0, 1, 1], [], []>, precision = #tpu.contract_precision<fp32>} : vector<16x4xf32>, vector<4x128xf32>, vector<16x128xf32> -> vector<16x128xf32>
    %40 = arith.mulf %38, %39 : vector<16x128xf32>
    %41 = arith.addf %40, %13 : vector<16x128xf32>
    %cst_29 = arith.constant 0.000000e+00 : f32
    %42 = vector.broadcast %cst_29 : f32 to vector<16x128xf32>
    %43 = arith.cmpf ogt, %41, %42 : vector<16x128xf32>
    %cst_30 = arith.constant 0.000000e+00 : f32
    %44 = vector.broadcast %cst_30 : f32 to vector<16x128xf32>
    %45 = arith.minimumf %41, %44 : vector<16x128xf32>
    %46 = math.exp %45 : vector<16x128xf32>
    %cst_31 = arith.constant 1.000000e+00 : f32
    %47 = vector.broadcast %cst_31 : f32 to vector<16x128xf32>
    %48 = arith.subf %46, %47 : vector<16x128xf32>
    %49 = arith.select %43, %41, %48 : vector<16x128xi1>, vector<16x128xf32>
    %cst_32 = arith.constant dense<0.000000e+00> : vector<16x4xf32>
    %50 = tpu.matmul %49, %9, %cst_32 {dimension_numbers = #tpu.dot_dimension_numbers<[1], [1], [0], [0], [0, 0, 1, 0], [], []>, precision = #tpu.contract_precision<fp32>} : vector<16x128xf32>, vector<4x128xf32>, vector<16x4xf32> -> vector<16x4xf32>
    %cst_33 = arith.constant 3.125000e-02 : f32
    %51 = vector.broadcast %cst_33 : f32 to vector<16x4xf32>
    %52 = arith.mulf %50, %51 : vector<16x4xf32>
    %cst_34 = arith.constant dense<0.000000e+00> : vector<16x128xf32>
    %53 = tpu.matmul %52, %9, %cst_34 {dimension_numbers = #tpu.dot_dimension_numbers<[1], [0], [0], [1], [0, 0, 1, 1], [], []>, precision = #tpu.contract_precision<fp32>} : vector<16x4xf32>, vector<4x128xf32>, vector<16x128xf32> -> vector<16x128xf32>
    %54 = arith.subf %49, %53 : vector<16x128xf32>
    %55 = arith.mulf %54, %54 : vector<16x128xf32>
    %cst_35 = arith.constant dense<0.000000e+00> : vector<16x4xf32>
    %56 = tpu.matmul %55, %9, %cst_35 {dimension_numbers = #tpu.dot_dimension_numbers<[1], [1], [0], [0], [0, 0, 1, 0], [], []>, precision = #tpu.contract_precision<fp32>} : vector<16x128xf32>, vector<4x128xf32>, vector<16x4xf32> -> vector<16x4xf32>
    %cst_36 = arith.constant 3.125000e-02 : f32
    %57 = vector.broadcast %cst_36 : f32 to vector<16x4xf32>
    %58 = arith.mulf %56, %57 : vector<16x4xf32>
    %cst_37 = arith.constant 9.99999974E-6 : f32
    %59 = vector.broadcast %cst_37 : f32 to vector<16x4xf32>
    %60 = arith.addf %58, %59 : vector<16x4xf32>
    %61 = math.rsqrt %60 : vector<16x4xf32>
    %cst_38 = arith.constant dense<0.000000e+00> : vector<16x128xf32>
    %62 = tpu.matmul %61, %9, %cst_38 {dimension_numbers = #tpu.dot_dimension_numbers<[1], [0], [0], [1], [0, 0, 1, 1], [], []>, precision = #tpu.contract_precision<fp32>} : vector<16x4xf32>, vector<4x128xf32>, vector<16x128xf32> -> vector<16x128xf32>
    %63 = arith.mulf %54, %62 : vector<16x128xf32>
    %c0_39 = arith.constant 0 : index
    %c0_40 = arith.constant 0 : index
    %64 = vector.load %arg9[%c0_39, %c0_40] : memref<1x128xf32, #tpu.memory_space<vmem>>, vector<1x128xf32>
    %65 = vector.broadcast %64 : vector<1x128xf32> to vector<16x128xf32>
    %66 = arith.mulf %63, %65 : vector<16x128xf32>
    %c0_41 = arith.constant 0 : index
    %c0_42 = arith.constant 0 : index
    %67 = vector.load %arg10[%c0_41, %c0_42] : memref<1x128xf32, #tpu.memory_space<vmem>>, vector<1x128xf32>
    %68 = vector.broadcast %67 : vector<1x128xf32> to vector<16x128xf32>
    %69 = arith.addf %66, %68 : vector<16x128xf32>
    %c0_43 = arith.constant 0 : index
    %c0_44 = arith.constant 0 : index
    %c0_45 = arith.constant 0 : index
    %70 = vector.load %arg11[%c0_43, %c0_44, %c0_45] : memref<1x16x128xf32, #tpu.memory_space<vmem>>, vector<1x16x128xf32>
    %71 = vector.shape_cast %70 : vector<1x16x128xf32> to vector<16x128xf32>
    %72 = vector.shape_cast %69 : vector<16x128xf32> to vector<1x16x128xf32>
    tpu.vector_store %arg11[%c0_43, %c0_44, %c0_45], %72 {strides = array<i32>} : memref<1x16x128xf32, #tpu.memory_space<vmem>>, vector<1x16x128xf32>,
    return
  }
  func.func @transform_0(%arg0: i32) -> (i32, i32, i32) {
    %c0_i32 = arith.constant 0 : i32
    %c0_i32_0 = arith.constant 0 : i32
    %c0_i32_1 = arith.constant 0 : i32
    return %arg0, %c0_i32, %c0_i32_0 : i32, i32, i32
  }
  func.func @transform_1(%arg0: i32) -> (i32, i32, i32) {
    %c0_i32 = arith.constant 0 : i32
    %c0_i32_0 = arith.constant 0 : i32
    %c0_i32_1 = arith.constant 0 : i32
    return %arg0, %c0_i32, %c0_i32_0 : i32, i32, i32
  }
  func.func @transform_2(%arg0: i32) -> (i32, i32) {
    %c0_i32 = arith.constant 0 : i32
    %c0_i32_0 = arith.constant 0 : i32
    %c0_i32_1 = arith.constant 0 : i32
    return %c0_i32, %c0_i32_0 : i32, i32
  }
  func.func @transform_3(%arg0: i32) -> (i32, i32) {
    %c0_i32 = arith.constant 0 : i32
    %c0_i32_0 = arith.constant 0 : i32
    %c0_i32_1 = arith.constant 0 : i32
    return %c0_i32, %c0_i32_0 : i32, i32
  }
  func.func @transform_4(%arg0: i32) -> (i32, i32) {
    %c0_i32 = arith.constant 0 : i32
    %c0_i32_0 = arith.constant 0 : i32
    %c0_i32_1 = arith.constant 0 : i32
    return %c0_i32, %c0_i32_0 : i32, i32
  }
  func.func @transform_5(%arg0: i32) -> (i32, i32) {
    %c0_i32 = arith.constant 0 : i32
    %c0_i32_0 = arith.constant 0 : i32
    %c0_i32_1 = arith.constant 0 : i32
    return %c0_i32, %c0_i32_0 : i32, i32
  }
  func.func @transform_6(%arg0: i32) -> (i32, i32) {
    %c0_i32 = arith.constant 0 : i32
    %c0_i32_0 = arith.constant 0 : i32
    %c0_i32_1 = arith.constant 0 : i32
    return %c0_i32, %c0_i32_0 : i32, i32
  }
  func.func @transform_7(%arg0: i32) -> (i32, i32) {
    %c0_i32 = arith.constant 0 : i32
    %c0_i32_0 = arith.constant 0 : i32
    %c0_i32_1 = arith.constant 0 : i32
    return %c0_i32, %c0_i32_0 : i32, i32
  }
  func.func @transform_8(%arg0: i32) -> (i32, i32) {
    %c0_i32 = arith.constant 0 : i32
    %c0_i32_0 = arith.constant 0 : i32
    %c0_i32_1 = arith.constant 0 : i32
    return %c0_i32, %c0_i32_0 : i32, i32
  }
  func.func @transform_9(%arg0: i32) -> (i32, i32) {
    %c0_i32 = arith.constant 0 : i32
    %c0_i32_0 = arith.constant 0 : i32
    %c0_i32_1 = arith.constant 0 : i32
    return %c0_i32, %c0_i32_0 : i32, i32
  }
  func.func @transform_10(%arg0: i32) -> (i32, i32, i32) {
    %c0_i32 = arith.constant 0 : i32
    %c0_i32_0 = arith.constant 0 : i32
    %c0_i32_1 = arith.constant 0 : i32
    return %arg0, %c0_i32, %c0_i32_0 : i32, i32, i32
  }
}

</mosaic_0001>

<bundles_post_ra>
// kernel: multi_head_gat.1
= control target key start
LH: loop header
LB: loop body
LE: loop exit
PB: predicated region body
PF: predicated region fallthrough
CT: control target
= control target key end

     0   :  { %15 = vsyncpa [#allocation3], 0  ;;  %s10160_s0 = inlined_call_operand.vmem [shape: f32[2,16,8], index: 0, kind: input, shape index: {}]   ;;  %s10161_s1 = inlined_call_operand.vmem [shape: bf16[2,16,16], index: 1, kind: input, shape index: {}]   ;;  %s10162_s2 = inlined_call_operand.vmem [shape: f32[8,264], index: 2, kind: input, shape index: {}]   ;;  %s10163_s3 = inlined_call_operand.vmem [shape: f32[4,64], index: 3, kind: input, shape index: {}]   ;;  %s10164_s4 = inlined_call_operand.vmem [shape: f32[16,64], index: 4, kind: input, shape index: {}]   ;;  %s10165_s5 = inlined_call_operand.vmem [shape: f32[64,16], index: 5, kind: input, shape index: {}]   ;;  %s10166_s6 = inlined_call_operand.vmem [shape: f32[64,128], index: 6, kind: input, shape index: {}]   ;;  %s10167_s7 = inlined_call_operand.vmem [shape: f32[4,128], index: 7, kind: input, shape index: {}]   ;;  %s10168_s8 = inlined_call_operand.vmem [shape: f32[1,128], index: 8, kind: input, shape index: {}]   ;;  %s10169_s9 = inlined_call_operand.vmem [shape: f32[1,128], index: 9, kind: input, shape index: {}]   ;;  %s10170_s10 = inlined_call_operand.hbm [shape: f32[2,16,128], index: 10, kind: output, shape index: {}]  }
   0x1   :  { %17 = vsyncpa [#allocation3 + $0x1], 0  ;;  %s9394_s13 = smov 0   ;;  %s9396_s14 = smov 0  }
   0x2   :  { %s9398_s15 = smov 0   ;;  %s9400_s16 = smov 0  }
   0x3 LB: > { %s9415_s17 = sadd.s32 4294967295, %s9330_s16   ;;  %s7926_s18 = sadd.s32 4294967294, %s9330_s16   ;;  %s9330_s16 = sphi %s9400_s16, %s10176_s16   ;;  %s9326_s15 = sphi %s9398_s15, %s10175_s15   ;;  %s9322_s14 = sphi %s9396_s14, %s10174_s14   ;;  %s9318_s13 = sphi %s9394_s13, %s10173_s13  }
   0x4   : > { %s9419_s19 = sadd.s32 1, %s9330_s16   ;;  %s250_s20 = sadd.s32 1, %s9326_s15 }
   0x5   : > { %s247_s21 = ssub.s32 %s9330_s16, %s9419_s19  ;;  %p260_p0 = scmp.ne.s32.totalorder %s9326_s15, %s9322_s14 }
   0x6   : > { %p248_p1 = scmp.eq.s32.totalorder %s247_s21, 0  ;;  %p261_p2 = scmp.eq.s32.totalorder %s9415_s17, 1 }
   0x7   : > { %p266_p3 = scmp.ne.s32.totalorder %s9322_s14, %s9318_s13  ;;  %p267_p4 = scmp.eq.s32.totalorder %s7926_s18, 1 }
   0x8   : > { %s9430_s22 = scalar_select %p248_p1, %s9326_s15, %s250_s20  }
   0x9   : > { %p9432_p5 = por %p261_p2, %p260_p0  ;;  %p9436_p6 = por %p267_p4, %p266_p3 }
   0xa   : > { %p7929_p7 = scmp.ge.s32.totalorder %s9330_s16, 1  ;;  %p325_p8 = scmp.lt.s32.totalorder %s9330_s16, 3 }
   0xc   : > { %p326_p9 = pnand %p7929_p7, %p325_p8 }
   0xd   : > { %v406_v0 = vld [vmem:[%s10162_s2 + $0x10] sm:$0xff] (!%p326_p9)  ;;  %p368_p10 = scmp.lt.s32.totalorder (!%p326_p9), %s9415_s17, 1  ;;  %vm407_vm0 = vcmask (!%p326_p9), 64512   ;;  %v9486_v20 = vld [vmem:[%s10163_s3] sm:$0xf] (!%p326_p9)  ;;  %vm1428_vm1 = vcmask (!%p326_p9), 1043456  }
   0xe   : > { %329 = sbr.rel (%p326_p9) target bundleno = 2859 (0xb2b), region = 60  ;;  %v929_v1 = vand.u32 (!%p326_p9), 4294901760, %v406_v0  ;;  %v1430_v21 = vsel (!%p326_p9), %vm1428_vm1, %v9486_v20, 0  ;;  %s9332_s20 = smov (!%p326_p9), 124   ;;  %v405_v29 = vld [vmem:[%s10162_s2 + $0x8] sm:$0xff] (!%p326_p9)  ;;  %v404_v30 = vld [vmem:[%s10162_s2] sm:$0xff] (!%p326_p9) }
   0xf   : > { %v9492_v23 = vand.u32 (!%p326_p9), 4294901760, %v1430_v21  ;;  %v414_v31 = vand.u32 (!%p326_p9), 4294901760, %v405_v29  ;;  %v416_v32 = vand.u32 (!%p326_p9), 4294901760, %v404_v30  ;;  %v9333_v33 = vmov (!%p326_p9), 0.0   ;;  %v386_v60 = vld [vmem:[%s10164_s4 + $0x8] sm:$0xff] (!%p326_p9)  ;;  %v385_v62 = vld [vmem:[%s10164_s4] sm:$0xff] (!%p326_p9) }
  0x10   : > { %8293 = vmatprep.subr.mxu1 (!%p326_p9), %v929_v1  ;;  %v1016_v2 = vsub.f32 (!%p326_p9), %v406_v0, %v929_v1  ;;  %480 = vmatprep.mubr.f32.mxu0 (!%p326_p9), %v9333_v33  ;;  %vm1423_vm2 = vcmask (!%p326_p9), 31744   ;;  %vm1923_vm3 = vcmask (!%p326_p9), 130048   ;;  %v9334_v56 = vmov (!%p326_p9), 0   ;;  %s365_s26 = sand.u32 (!%p326_p9), 1, %s9322_s14   ;;  %s7958_s21 = sshll.u32 (!%p326_p9), %s9415_s17, 8 }
  0x11   : > { %8294 = vmatpush3.msra.mxu1 (!%p326_p9), %v929_v1  ;;  %v9499_v25 = vsub.f32 (!%p326_p9), %v1430_v21, %v9492_v23  ;;  %415 = vmatprep.subr.mxu0 (!%p326_p9), %v414_v31  ;;  %v510_v34 = vsub.f32 (!%p326_p9), %v404_v30, %v416_v32  ;;  %v504_v35 = vsub.f32 (!%p326_p9), %v405_v29, %v414_v31  ;;  %v1925_v57 = vsel (!%p326_p9), %vm1923_vm3, 1.0, %v9334_v56  ;;  %s10117_s29 = scalar_lea.hbm (!%p326_p9), %s10170_s10, %s7958_s21 }
  0x12   : > { %v1017_v3 = vand.u32 (!%p326_p9), 4294901760, %v1016_v2  ;;  %417 = vmatpush1.msra.mxu0 (!%p326_p9), %v416_v32  ;;  %v9539_v58 = vsub.f32 (!%p326_p9), %v1925_v57, %v1925_v57  ;;  %v2938_v61 = vand.u32 (!%p326_p9), 4294901760, %v386_v60  ;;  %v2935_v0 = vand.u32 (!%p326_p9), 4294901760, %v385_v62 }
  0x13   : > { %v9503_v26 = vand.u32 (!%p326_p9), 4294901760, %v9499_v25  ;;  %v505_v36 = vand.u32 (!%p326_p9), 4294901760, %v504_v35  ;;  %v511_v37 = vand.u32 (!%p326_p9), 4294901760, %v510_v34  ;;  %vm3436_vm4 = vcmask (!%p326_p9), 523264  }
  0x14   : > { %v1018_v8 = vsub.f32 (!%p326_p9), %v1016_v2, %v1017_v3  ;;  %v9542_v59 = vand.u32 (!%p326_p9), 4294901760, %v9539_v58 }
  0x15   : > { %s9447_s27 = scalar_select %p368_p10, %s9415_s17, 1  ;;  %v1522_v27 = vsub.f32 %v9499_v25, %v9503_v26  ;;  %v506_v38 = vsub.f32 %v504_v35, %v505_v36  ;;  %v512_v39 = vsub.f32 %v510_v34, %v511_v37 }
  0x16   : > { %v1019_v11 = vand.u32 4294901760, %v1018_v8  ;;  %v1997_v63 = vsub.f32 %v9539_v58, %v9542_v59  ;;  %s9336_s17 = smov [#allocation2]  }
  0x17   : > { %s7956_s28 = sshll.u32 %s9447_s27, 4  ;;  %v9508_v28 = vand.u32 4294901760, %v1522_v27  ;;  %v507_v40 = vand.u32 4294901760, %v506_v38  ;;  %v513_v41 = vand.u32 4294901760, %v512_v39  ;;  %s7957_s18 = sshll.u32 %s9447_s27, 3 }
  0x18   : > { %s372_s11 = scalar_lea.vmem %s10160_s0, %s7956_s28  ;;  %8298 = vmatprep.subr.mxu1 %v1019_v11  ;;  %s377_s25 = scalar_lea.vmem %s10161_s1, %s7957_s18 }
  0x19   : > { %v378_v4 = vld [vmem:[%s372_s11] sm:$0xff]  ;;  %v379_v5 = vld [vmem:[%s372_s11 + $0x8] sm:$0xff]  ;;  %508 = vmatprep.subr.mxu0 %v507_v40  ;;  %s7930_s28 = sshll.u32 %s365_s26, 4  ;;  %s9272_s11 = sshll.u32 %s9336_s17, 4  ;;  %s9273_s11 = int_to_ptr.vmem [resolvable:$false] %s9272_s11 }
  0x1a   : > { %v409_v6 = vsel %vm407_vm0, %v378_v4, 0  ;;  %v412_v7 = vsel %vm407_vm0, %v379_v5, 0  ;;  %s367_s18 = scalar_lea.vmem [#allocation2], %s7930_s28  ;;  %s10119_s28 = scalar_lea.sflag [#allocation3], %s365_s26 }
  0x1b   : > { %v9453_v9 = vand.u32 4294901760, %v409_v6  ;;  %v9455_v10 = vand.u32 4294901760, %v412_v7  ;;  %s9274_s12 = scalar_lea.vmem %s9273_s11, 512 }
  0x1d   : > { %v9458_v12 = vsub.f32 %v409_v6, %v9453_v9  ;;  %v9461_v13 = vsub.f32 %v412_v7, %v9455_v10 }
  0x1f   : > { %v9464_v14 = vand.u32 4294901760, %v9458_v12  ;;  %v9467_v15 = vand.u32 4294901760, %v9461_v13 }
  0x21   : > { %v484_v16 = vsub.f32 %v9458_v12, %v9464_v14  ;;  %v495_v17 = vsub.f32 %v9461_v13, %v9467_v15 }
  0x23   : > { %v485_v18 = vand.u32 4294901760, %v484_v16  ;;  %v496_v19 = vand.u32 4294901760, %v495_v17 }
  0x25   : > { %8295 = vmatprep.mubr.f32.mxu1 %v485_v18  ;;  %486 = vmatmul.mubr.f32.vlgmr.msra.gmra.mrb[0].mxu0 %v485_v18 }
  0x26   : > { %8296 = vmatmul.mubr.f32.vlgmr.msra.gmra.mrb[0].mxu1 %v496_v19  ;;  %491 = vmatprep.mubr.f32.mxu0 %v9333_v33 }
  0x27   : > { %8299 = vmatpush3.msra.mxu1 %v1019_v11  ;;  %8300 = vmatprep.mubr.f32.mxu1 %v9453_v9 }
  0x28   : > { %8303 = vmatprep.subr.mxu1 %v1016_v2  ;;  %514 = vmatpush1.msra.mxu0 %v513_v41 }
  0x29   : > { %497 = vmatmul.mubr.f32.gmra.mrb[2].mxu0 %v496_v19  ;;  %594 = vmatprep.subr.mxu0 %v504_v35 }
  0x2a   : > { %577 = vmatprep.mubr.f32.mxu0 %v9333_v33 }
  0x2d   : > { %579 = vmatmul.mubr.f32.vlgmr.msra.gmra.mrb[0].mxu0 %v9453_v9 }
  0x2e   : > { %8301 = vmatmul.mubr.f32.vlgmr.msra.gmra.mrb[0].mxu1 %v9455_v10  ;;  %584 = vmatprep.mubr.f32.mxu0 %v9333_v33 }
  0x2f   : > { %8304 = vmatpush3.msra.mxu1 %v1016_v2  ;;  %8305 = vmatprep.mubr.f32.mxu1 %v9458_v12  ;;  %v9552_v2 = vpack.c.bf16 %v2938_v61, %v2935_v0 }
  0x30   : > { %8308 = vmatprep.subr.mxu1 %v929_v1  ;;  %597 = vmatpush1.msra.mxu0 %v510_v34 }
  0x31   : > { %678 = vmatprep.subr.mxu0 %v414_v31  ;;  %586 = vmatmul.mubr.f32.gmra.mrb[2].mxu0 %v9455_v10 }
  0x32   : > { %660 = vmatprep.mubr.f32.mxu0 %v9333_v33 }
  0x35   : > { %663 = vmatmul.mubr.f32.vlgmr.msra.gmra.mrb[0].mxu0 %v9458_v12 }
  0x36   : > { %8306 = vmatmul.mubr.f32.vlgmr.msra.gmra.mrb[0].mxu1 %v9461_v13  ;;  %668 = vmatprep.mubr.f32.mxu0 %v9333_v33 }
  0x37   : > { %8309 = vmatpush3.msra.mxu1 %v929_v1  ;;  %8310 = vmatprep.mubr.f32.mxu1 %v9464_v14 }
  0x38   : > { %8313 = vmatprep.subr.mxu1 %v1017_v3  ;;  %680 = vmatpush1.msra.mxu0 %v416_v32 }
  0x39   : > { %765 = vmatprep.subr.mxu0 %v505_v36  ;;  %671 = vmatmul.mubr.f32.gmra.mrb[2].mxu0 %v9461_v13 }
  0x3a   : > { %743 = vmatprep.mubr.f32.mxu0 %v9333_v33 }
  0x3d   : > { %747 = vmatmul.mubr.f32.vlgmr.msra.gmra.mrb[0].mxu0 %v9464_v14 }
  0x3e   : > { %8311 = vmatmul.mubr.f32.vlgmr.msra.gmra.mrb[0].mxu1 %v9467_v15  ;;  %752 = vmatprep.mubr.f32.mxu0 %v9333_v33 }
  0x3f   : > { %8314 = vmatpush3.msra.mxu1 %v1017_v3  ;;  %8315 = vmatprep.mubr.f32.mxu1 %v9453_v9 }
  0x40   : > { %8318 = vmatprep.subr.mxu1 %v929_v1  ;;  %769 = vmatpush1.msra.mxu0 %v511_v37 }
  0x41   : > { %848 = vmatprep.subr.mxu0 %v414_v31  ;;  %756 = vmatmul.mubr.f32.gmra.mrb[2].mxu0 %v9467_v15 }
  0x42   : > { %832 = vmatprep.mubr.f32.mxu0 %v9333_v33 }
  0x45   : > { %834 = vmatmul.mubr.f32.vlgmr.msra.gmra.mrb[0].mxu0 %v9453_v9 }
  0x46   : > { %8316 = vmatmul.mubr.f32.vlgmr.msra.gmra.mrb[0].mxu1 %v9455_v10  ;;  %839 = vmatprep.mubr.f32.mxu0 %v9333_v33 }
  0x47   : > { %8319 = vmatpush3.msra.mxu1 %v929_v1  ;;  %8320 = vmatprep.mubr.f32.mxu1 %v9453_v9  ;;  %v1998_v1 = vand.u32 4294901760, %v1997_v63 }
  0x48   : > { %8323 = vmatprep.subr.mxu1 %v9492_v23  ;;  %850 = vmatpush1.msra.mxu0 %v416_v32 }
  0x49   : > { %841 = vmatmul.mubr.f32.gmra.mrb[2].mxu0 %v9455_v10 }
  0x4a   : > { %913 = vmatprep.mubr.f32.mxu0 %v9333_v33 }
  0x4d   : > { %915 = vmatmul.mubr.f32.vlgmr.msra.gmra.mrb[0].mxu0 %v9453_v9 }
  0x4e   : > { %8321 = vmatmul.mubr.f32.vlgmr.msra.gmra.mrb[0].mxu1 %v9455_v10  ;;  %920 = vmatprep.mubr.f32.mxu0 %v9333_v33 }
  0x4f   : > { %8324 = vmatpush3.msra.mxu1 %v9492_v23 }
  0x50   : > { %8328 = vmatprep.subr.mxu1 %v9508_v28 }
  0x51   : > { %922 = vmatmul.mubr.f32.gmra.mrb[2].mxu0 %v9455_v10 }
  0x52   : > { %8357 = vmatprep.mubr.f32.mxu0 %v1998_v1 }
 0x120   : > { %v916_v3 = vpop.f32.mrb[0].mxu0 }
 0x121   : > { %v9490_v22 = vpop.f32.mrb[0].mxu1  ;;  %v3975_v4 = vand.u32 4294901760, %v916_v3  ;;  %v9556_v5 = vpop.f32.mrb[1].mxu0 }
 0x122   : > { %v9494_v24 = vpop.f32.mrb[1].mxu1 }
 0x123   : > { %1419 = vrot.lane.b32.xlu0 %v9494_v24, %s9332_s20  ;;  %v4123_v7 = vsub.f32 %v916_v3, %v3975_v4 }
 0x124   : > { %v923_v6 = vpop.f32.mrb[2].mxu0 }
 0x125   : > { %v3978_v8 = vand.u32 4294901760, %v923_v6  ;;  %v4124_v9 = vand.u32 4294901760, %v4123_v7 }
 0x127   : > { %1421 = vrot.lane.b32.xlu0 %v9490_v22, %s9332_s20  ;;  %v9558_v10 = vpack.c.bf16 %v3978_v8, %v3975_v4  ;;  %v4130_v11 = vsub.f32 %v923_v6, %v3978_v8  ;;  %v4125_v12 = vsub.f32 %v4123_v7, %v4124_v9  ;;  %v2429_v8 = vsel %vm1423_vm2, %v9494_v24, 0  ;;  %s7852_s20 = sshll.u32 %s367_s18, 4  ;;  %s10112_s20 = int_to_ptr.vmem [resolvable:$true] %s7852_s20 }
 0x128   : > { %s9268_s30 = scalar_lea.vmem %s10112_s20, 256  ;;  %p9275_p0 = scmp.lt.s32.totalorder %s10112_s20, %s9273_s11 }
 0x129   : > { %v4131_v13 = vand.u32 4294901760, %v4130_v11  ;;  %v4126_v15 = vand.u32 4294901760, %v4125_v12  ;;  %v9562_v18 = vpack.c.bf16 %v4130_v11, %v4123_v7  ;;  %p9269_p11 = scmp.ne.s32.totalorder %s10112_s20, %s9268_s30  ;;  %p9276_p1 = scmp.lt.s32.totalorder %s9274_s12, %s9268_s30 }
 0x12b   : > { %v4132_v14 = vsub.f32 %v4130_v11, %v4131_v13  ;;  %p9270_p12 = pnand %p9269_p11, %p9432_p5  ;;  %p9277_p2 = por %p9276_p1, %p9275_p0 }
 0x12d   : > { %v4133_v16 = vand.u32 4294901760, %v4132_v14  ;;  %p9271_p13 = pneg %p9270_p12 }
 0x12f   : > { %v9560_v17 = vpack.c.bf16 %v4133_v16, %v4126_v15  ;;  %p9278_p3 = pnand %p9277_p2, %p9271_p13 }
 0x195   : > { %v1420_v42 = vpop.permute.xlu0 %1419 }
 0x196   : > { %v1424_v43 = vsel %vm1423_vm2, %v1420_v42, 0 }
 0x197   : > { %v1498_v44 = vand.u32 4294901760, %v1424_v43 }
 0x199   : > { %v1499_v45 = vsub.f32 %v1424_v43, %v1498_v44  ;;  %v1422_v46 = vpop.permute.xlu0 %1421  ;;  %v9335_v43 = vmov 1.0  }
 0x19a   : > { %v1426_v47 = vsel %vm1423_vm2, %v1422_v46, 0  ;;  %v7960_v46 = vld [vmem:[%s377_s25] sm:$0xff]  }
 0x19b   : > { %v1500_v48 = vand.u32 4294901760, %v1499_v45  ;;  %v1508_v49 = vand.u32 4294901760, %v1426_v47 }
 0x19d   : > { %v1509_v50 = vsub.f32 %v1426_v47, %v1508_v49  ;;  %v1501_v51 = vsub.f32 %v1499_v45, %v1500_v48  ;;  %v9578_v47 = vpop.f32.mrb[3].mxu0 }
 0x19f   : > { %v1510_v52 = vand.u32 4294901760, %v1509_v50  ;;  %v1502_v53 = vand.u32 4294901760, %v1501_v51  ;;  %v9584_v51 = vunpack.c.l.bf16 %v7960_v46 }
 0x1a1   : > { %v1511_v54 = vsub.f32 %v1509_v50, %v1510_v52  ;;  %8325 = vmatprep.mubr.f32.mxu1 %v1502_v53  ;;  %v2929_v57 = vsel %vm1923_vm3, %v9584_v51, 0 }
 0x1a3   : > { %v1512_v55 = vand.u32 4294901760, %v1511_v54 }
 0x1a5   : > { %8326 = vmatmul.mubr.f32.vlgmr.msra.gmra.mrb[2].mxu1 %v1512_v55 }
 0x1a6   : > { %8330 = vmatprep.mubr.f32.mxu1 %v1498_v44  ;;  %8329 = vmatpush3.msra.mxu1 %v9508_v28 }
 0x1a7   : > { %8333 = vmatprep.subr.mxu1 %v9499_v25 }
 0x1ad   : > { %8331 = vmatmul.mubr.f32.vlgmr.msra.gmra.mrb[2].mxu1 %v1508_v49 }
 0x1ae   : > { %8335 = vmatprep.mubr.f32.mxu1 %v1499_v45  ;;  %8334 = vmatpush3.msra.mxu1 %v9499_v25  ;;  %v9574_v45 = vpack.c.bf16 %v4131_v13, %v4124_v9  ;;  %v2431_v13 = vsel %vm1423_vm2, %v9490_v22, 0 }
 0x1af   : > { %8338 = vmatprep.subr.mxu1 %v9492_v23  ;;  %v2509_v24 = vand.u32 4294901760, %v2431_v13 }
 0x1b5   : > { %8336 = vmatmul.mubr.f32.vlgmr.msra.gmra.mrb[2].mxu1 %v1509_v50  ;;  %v3023_v50 = vsub.f32 %v385_v62, %v2935_v0 }
 0x1b6   : > { %8340 = vmatprep.mubr.f32.mxu1 %v1500_v48  ;;  %8339 = vmatpush3.msra.mxu1 %v9492_v23  ;;  %v9580_v48 = vunpack.c.h.bf16 %v7960_v46 }
 0x1b7   : > { %8343 = vmatprep.subr.mxu1 %v9503_v26  ;;  %v3024_v53 = vand.u32 4294901760, %v3023_v50 }
 0x1b9   : > { %v3025_v63 = vsub.f32 %v3023_v50, %v3024_v53 }
 0x1bd   : > { %8341 = vmatmul.mubr.f32.vlgmr.msra.gmra.mrb[2].mxu1 %v1510_v52  ;;  %v2932_v52 = vsel %vm1923_vm3, %v9580_v48, 0 }
 0x1be   : > { %8345 = vmatprep.mubr.f32.mxu1 %v1498_v44  ;;  %8344 = vmatpush3.msra.mxu1 %v9503_v26  ;;  %v3012_v55 = vsub.f32 %v2932_v52, %v2932_v52 }
 0x1bf   : > { %8348 = vmatprep.subr.mxu1 %v9492_v23 }
 0x1c0   : > { %v3013_v0 = vand.u32 4294901760, %v3012_v55 }
 0x1c2   : > { %v3014_v6 = vsub.f32 %v3012_v55, %v3013_v0 }
 0x1c4   : > { %v3015_v12 = vand.u32 4294901760, %v3014_v6  ;;  %v3457_v6 = vsel %vm3436_vm4, %v9486_v20, 0 }
 0x1c5   : > { %8346 = vmatmul.mubr.f32.vlgmr.msra.gmra.mrb[2].mxu1 %v1508_v49 }
 0x1c6   : > { %8350 = vmatprep.mubr.f32.mxu1 %v1498_v44  ;;  %8349 = vmatpush3.msra.mxu1 %v9492_v23 }
 0x1c7   : > { %8882 = vmatprep.subr.bf16.mxu1 %v9552_v2 }
 0x1cd   : > { %8351 = vmatmul.mubr.f32.vlgmr.msra.gmra.mrb[2].mxu1 %v1508_v49  ;;  %v3030_v49 = vsub.f32 %v386_v60, %v2938_v61 }
 0x1ce   : > { %8884 = vmatpush3.bf16.msra.mxu1 %v9552_v2 }
 0x1cf   : > { %v3031_v54 = vand.u32 4294901760, %v3030_v49  ;;  %v8889_v56 = vpack.c.bf16 %v3030_v49, %v3023_v50 }
 0x1d1   : > { %v8897_v61 = vpack.c.bf16 %v3031_v54, %v3024_v53 }
 0x2a0   : > { %v8352_v19 = vpop.f32.mrb[2].mxu1 }
 0x2a1   : > { %v1922_v21 = vmul.f32 %v8352_v19, %v386_v60  ;;  %v1911_v27 = vpop.f32.mrb[3].mxu1  ;;  %v3032_v60 = vsub.f32 %v3030_v49, %v3031_v54 }
 0x2a2   : > { %v1921_v29 = vmul.f32 %v1911_v27, %v385_v62  ;;  %v3002_v62 = vsub.f32 %v2929_v57, %v2929_v57 }
 0x2a3   : > { %v1931_v30 = vand.u32 4294901760, %v1922_v21  ;;  %v3033_v3 = vand.u32 4294901760, %v3032_v60 }
 0x2a4   : > { %v1928_v31 = vand.u32 4294901760, %v1921_v29  ;;  %v3003_v4 = vand.u32 4294901760, %v3002_v62 }
 0x2a5   : > { %v2023_v32 = vsub.f32 %v1922_v21, %v1931_v30 }
 0x2a6   : > { %v9564_v33 = vpack.c.bf16 %v1931_v30, %v1928_v31  ;;  %v2016_v34 = vsub.f32 %v1921_v29, %v1928_v31  ;;  %v3004_v9 = vsub.f32 %v3002_v62, %v3003_v4 }
 0x2a7   : > { %v2024_v35 = vand.u32 4294901760, %v2023_v32 }
 0x2a8   : > { %v2017_v36 = vand.u32 4294901760, %v2016_v34  ;;  %8858 = vmatprep.subr.bf16.mxu0 %v9564_v33  ;;  %v8865_v37 = vpack.c.bf16 %v2023_v32, %v2016_v34  ;;  %v3005_v11 = vand.u32 4294901760, %v3004_v9 }
 0x2a9   : > { %8860 = vmatpush3.bf16.msra.mxu0 %v9564_v33  ;;  %v2025_v38 = vsub.f32 %v2023_v32, %v2024_v35  ;;  %v391_v32 = vld [vmem:[%s10165_s5 + $0x20] sm:$0xff] }
 0x2aa   : > { %v2018_v39 = vsub.f32 %v2016_v34, %v2017_v36  ;;  %v8873_v40 = vpack.c.bf16 %v2024_v35, %v2017_v36  ;;  %8429 = vmatprep.mubr.f32.mxu1 %v3005_v11  ;;  %v3963_v36 = vsel %vm1923_vm3, %v391_v32, 0 }
 0x2ab   : > { %v2026_v41 = vand.u32 4294901760, %v2025_v38  ;;  %8430 = vmatmul.mubr.f32.vlgmr.msra.gmra.mrb[4].mxu1 %v3015_v12  ;;  %v393_v38 = vld [vmem:[%s10165_s5 + $0x30] sm:$0xff] }
 0x2ac   : > { %8358 = vmatmul.mubr.f32.vlgmr.msra.gmra.mrb[4].mxu0 %v1998_v1  ;;  %v2019_v42 = vand.u32 4294901760, %v2018_v39  ;;  %v3026_v1 = vand.u32 4294901760, %v3025_v63  ;;  %8436 = vmatprep.mubr.msk.f32.mxu1 %vm1923_vm3, %v9584_v51  ;;  %v9676_v39 = vand.u32 4294901760, %v3963_v36 }
 0x2ad   : > { %8364 = vmatprep.mubr.msk.f32.mxu0 %vm1923_vm3, %v9335_v43 }
 0x2ae   : > { %v8861_v44 = vpack.c.bf16 %v2026_v41, %v2019_v42  ;;  %v8885_v7 = vpack.c.bf16 %v3033_v3, %v3026_v1  ;;  %v3969_v41 = vsel %vm1923_vm3, %v393_v38, 0  ;;  %v394_v42 = vld [vmem:[%s10165_s5 + $0x38] sm:$0xff]  ;;  %v9704_v52 = vsub.f32 %v3963_v36, %v9676_v39  ;;  %v9741_v1 = vld [vmem:[%s10167_s7] sm:$0xf] }
 0x2af   : > { %v3972_v46 = vsel %vm1923_vm3, %v394_v42, 0  ;;  %v9750_v3 = vsel %vm1428_vm1, %v9741_v1, 0 }
 0x2b0   : > { %8862 = vmatprep.subr.bf16.mxu0 %v8861_v44  ;;  %8886 = vmatprep.subr.bf16.mxu1 %v8885_v7 }
 0x2b1   : > { %8864 = vmatpush3.bf16.msra.mxu0 %v8861_v44  ;;  %8888 = vmatpush3.bf16.msra.mxu1 %v8885_v7  ;;  %v4101_v44 = vand.u32 4294901760, %v3969_v41  ;;  %v9772_v7 = vand.u32 4294901760, %v3457_v6 }
 0x2b2   : > { %8866 = vmatprep.subr.bf16.mxu0 %v8865_v37  ;;  %8890 = vmatprep.subr.bf16.mxu1 %v8889_v56 }
 0x2b3   : > { %v9712_v54 = vsub.f32 %v3969_v41, %v4101_v44 }
 0x2b4   : > { %8365 = vmatmul.mubr.msk.f32.vlgmr.msra.gmra.mrb[4].mxu0 %vm1923_vm3, %v9335_v43  ;;  %8437 = vmatmul.mubr.msk.f32.vlgmr.msra.gmra.mrb[4].mxu1 %vm1923_vm3, %v9580_v48 }
 0x2b5   : > { %8868 = vmatpush3.bf16.msra.mxu0 %v8865_v37  ;;  %8371 = vmatprep.mubr.f32.mxu0 %v9539_v58  ;;  %v392_v37 = vld [vmem:[%s10165_s5 + $0x28] sm:$0xff] }
 0x2b6   : > { %8870 = vmatprep.subr.bf16.mxu0 %v9564_v33  ;;  %8892 = vmatpush3.bf16.msra.mxu1 %v8889_v56 }
 0x2b7   : > { %8443 = vmatprep.mubr.f32.mxu1 %v3002_v62  ;;  %8894 = vmatprep.subr.bf16.mxu1 %v9552_v2 }
 0x2bc   : > { %8372 = vmatmul.mubr.f32.vlgmr.msra.gmra.mrb[4].mxu0 %v9539_v58  ;;  %v2499_v58 = vand.u32 4294901760, %v2429_v8  ;;  %8444 = vmatmul.mubr.f32.vlgmr.msra.gmra.mrb[4].mxu1 %v3012_v55 }
 0x2bd   : > { %8872 = vmatpush3.bf16.msra.mxu0 %v9564_v33  ;;  %8378 = vmatprep.mubr.f32.mxu0 %v9542_v59 }
 0x2be   : > { %8874 = vmatprep.subr.bf16.mxu0 %v8873_v40  ;;  %v2500_v14 = vsub.f32 %v2429_v8, %v2499_v58  ;;  %8896 = vmatpush3.bf16.msra.mxu1 %v9552_v2 }
 0x2bf   : > { %8450 = vmatprep.mubr.f32.mxu1 %v3003_v4  ;;  %8898 = vmatprep.subr.bf16.mxu1 %v8897_v61  ;;  %v9756_v4 = vand.u32 4294901760, %v9750_v3 }
 0x2c0   : > { %v2501_v15 = vand.u32 4294901760, %v2500_v14 }
 0x2c2   : > { %v2502_v22 = vsub.f32 %v2500_v14, %v2501_v15 }
 0x2c4   : > { %8379 = vmatmul.mubr.f32.vlgmr.msra.gmra.mrb[4].mxu0 %v9542_v59  ;;  %v2510_v59 = vsub.f32 %v2431_v13, %v2509_v24  ;;  %v2503_v19 = vand.u32 4294901760, %v2502_v22  ;;  %8451 = vmatmul.mubr.f32.vlgmr.msra.gmra.mrb[4].mxu1 %v3013_v0  ;;  %v4103_v0 = vand.u32 4294901760, %v9712_v54 }
 0x2c5   : > { %8876 = vmatpush3.bf16.msra.mxu0 %v8873_v40  ;;  %8385 = vmatprep.mubr.msk.f32.mxu0 %vm1923_vm3, %v9335_v43  ;;  %v3966_v40 = vsel %vm1923_vm3, %v392_v37, 0 }
 0x2c6   : > { %8878 = vmatprep.subr.bf16.mxu0 %v9564_v33  ;;  %v2511_v16 = vand.u32 4294901760, %v2510_v59  ;;  %8900 = vmatpush3.bf16.msra.mxu1 %v8897_v61  ;;  %v4083_v61 = vand.u32 4294901760, %v9704_v52 }
 0x2c7   : > { %8457 = vmatprep.mubr.msk.f32.mxu1 %vm1923_vm3, %v9584_v51  ;;  %8902 = vmatprep.subr.bf16.mxu1 %v9552_v2 }
 0x2c8   : > { %v2512_v21 = vsub.f32 %v2510_v59, %v2511_v16 }
 0x2ca   : > { %v2513_v27 = vand.u32 4294901760, %v2512_v21 }
 0x2cc   : > { %8386 = vmatmul.mubr.msk.f32.vlgmr.msra.gmra.mrb[4].mxu0 %vm1923_vm3, %v9335_v43  ;;  %8458 = vmatmul.mubr.msk.f32.vlgmr.msra.gmra.mrb[4].mxu1 %vm1923_vm3, %v9580_v48 }
 0x2cd   : > { %8880 = vmatpush3.bf16.msra.mxu0 %v9564_v33  ;;  %8392 = vmatprep.mubr.msk.f32.mxu0 %vm1923_vm3, %v9335_v43 }
 0x2ce   : > { %8395 = vmatprep.subr.mxu0 %v9492_v23  ;;  %8904 = vmatpush3.bf16.msra.mxu1 %v9552_v2  ;;  %v388_v2 = vld [vmem:[%s10165_s5 + $0x8] sm:$0xff] }
 0x2cf   : > { %8464 = vmatprep.mubr.msk.f32.mxu1 %vm1923_vm3, %v9584_v51  ;;  %v3954_v30 = vsel %vm1923_vm3, %v388_v2, 0  ;;  %8467 = vmatprep.subr.mxu1 %v9772_v7 }
 0x2d0   : > { %v9657_v33 = vand.u32 4294901760, %v3954_v30 }
 0x2d2   : > { %v9692_v49 = vsub.f32 %v3954_v30, %v9657_v33 }
 0x2d4   : > { %8393 = vmatmul.mubr.msk.f32.vlgmr.msra.gmra.mrb[4].mxu0 %vm1923_vm3, %v9335_v43  ;;  %8465 = vmatmul.mubr.msk.f32.vlgmr.msra.gmra.mrb[4].mxu1 %vm1923_vm3, %v9580_v48  ;;  %v4091_v43 = vand.u32 4294901760, %v3966_v40  ;;  %v4111_v48 = vand.u32 4294901760, %v3972_v46  ;;  %v4053_v57 = vand.u32 4294901760, %v9692_v49 }
 0x2d5   : > { %8397 = vmatprep.mubr.f32.mxu0 %v2503_v19  ;;  %8396 = vmatpush3.msra.mxu0 %v9492_v23 }
 0x2d6   : > { %8400 = vmatprep.subr.mxu0 %v9508_v28  ;;  %v9709_v53 = vsub.f32 %v3966_v40, %v4091_v43  ;;  %v9715_v55 = vsub.f32 %v3972_v46, %v4111_v48 }
 0x2d7   : > { %8468 = vmatpush3.xpose.msra.mxu1 %v9772_v7 }
 0x2d8   : > { %v4093_v62 = vand.u32 4294901760, %v9709_v53 }
 0x2dc   : > { %8398 = vmatmul.mubr.f32.vlgmr.msra.gmra.mrb[4].mxu0 %v2513_v27 }
 0x2dd   : > { %8402 = vmatprep.mubr.f32.mxu0 %v2499_v58  ;;  %8401 = vmatpush3.msra.mxu0 %v9508_v28 }
 0x2de   : > { %8405 = vmatprep.subr.mxu0 %v9499_v25 }
 0x2e4   : > { %8403 = vmatmul.mubr.f32.vlgmr.msra.gmra.mrb[4].mxu0 %v2509_v24 }
 0x2e5   : > { %8407 = vmatprep.mubr.f32.mxu0 %v2500_v14  ;;  %8406 = vmatpush3.msra.mxu0 %v9499_v25  ;;  %v387_v25 = vld [vmem:[%s10165_s5] sm:$0xff] }
 0x2e6   : > { %8410 = vmatprep.subr.mxu0 %v9492_v23  ;;  %v3951_v28 = vsel %vm1923_vm3, %v387_v25, 0 }
 0x2e7   : > { %v9647_v29 = vand.u32 4294901760, %v3951_v28 }
 0x2ec   : > { %8408 = vmatmul.mubr.f32.vlgmr.msra.gmra.mrb[4].mxu0 %v2510_v59  ;;  %v3547_v59 = vsub.f32 %v3457_v6, %v9772_v7 }
 0x2ed   : > { %8412 = vmatprep.mubr.f32.mxu0 %v2501_v15  ;;  %8411 = vmatpush3.msra.mxu0 %v9492_v23 }
 0x2ee   : > { %8415 = vmatprep.subr.mxu0 %v9503_v26  ;;  %v3548_v22 = vand.u32 4294901760, %v3547_v59 }
 0x2f4   : > { %8413 = vmatmul.mubr.f32.vlgmr.msra.gmra.mrb[4].mxu0 %v2511_v16  ;;  %v3549_v16 = vsub.f32 %v3547_v59, %v3548_v22 }
 0x2f5   : > { %8417 = vmatprep.mubr.f32.mxu0 %v2499_v58  ;;  %8416 = vmatpush3.msra.mxu0 %v9503_v26  ;;  %v389_v26 = vld [vmem:[%s10165_s5 + $0x10] sm:$0xff] }
 0x2f6   : > { %8420 = vmatprep.subr.mxu0 %v9492_v23  ;;  %v3957_v31 = vsel %vm1923_vm3, %v389_v26, 0  ;;  %v3550_v19 = vand.u32 4294901760, %v3549_v16 }
 0x2f7   : > { %v9661_v34 = vand.u32 4294901760, %v3957_v31 }
 0x2f8   : > { %8472 = vmatprep.subr.mxu1 %v3550_v19 }
 0x2f9   : > { %v9696_v50 = vsub.f32 %v3957_v31, %v9661_v34 }
 0x2fb   : > { %v4063_v63 = vand.u32 4294901760, %v9696_v50 }
 0x2fc   : > { %8418 = vmatmul.mubr.f32.vlgmr.msra.gmra.mrb[4].mxu0 %v2509_v24 }
 0x2fd   : > { %8422 = vmatprep.mubr.f32.mxu0 %v2499_v58  ;;  %8421 = vmatpush3.msra.mxu0 %v9492_v23  ;;  %v390_v23 = vld [vmem:[%s10165_s5 + $0x18] sm:$0xff] }
 0x2fe   : > { %8910 = vmatprep.subr.bf16.mxu0 %v9560_v17  ;;  %v3960_v35 = vsel %vm1923_vm3, %v390_v23, 0 }
 0x304   : > { %8423 = vmatmul.mubr.f32.vlgmr.msra.gmra.mrb[4].mxu0 %v2509_v24 }
 0x305   : > { %8912 = vmatpush3.bf16.msra.mxu0 %v9560_v17  ;;  %8517 = vmatprep.mubr.f32.mxu0 %v9647_v29  ;;  %v9673_v17 = vand.u32 4294901760, %v3960_v35 }
 0x306   : > { %8914 = vmatprep.subr.bf16.mxu0 %v9562_v18 }
 0x307   : > { %v9700_v51 = vsub.f32 %v3960_v35, %v9673_v17 }
 0x308   : > { %8518 = vmatmul.mubr.f32.vlgmr.msra.gmra.mrb[6].mxu0 %v9657_v33 }
 0x309   : > { %8520 = vmatprep.mubr.f32.mxu0 %v9661_v34  ;;  %8916 = vmatpush3.bf16.msra.mxu0 %v9562_v18  ;;  %v9689_v18 = vsub.f32 %v3951_v28, %v9647_v29  ;;  %v4073_v60 = vand.u32 4294901760, %v9700_v51 }
 0x30a   : > { %8918 = vmatprep.subr.bf16.mxu0 %v9558_v10 }
 0x30b   : > { %v4043_v56 = vand.u32 4294901760, %v9689_v18 }
 0x30c   : > { %8521 = vmatmul.mubr.f32.gmra.mrb[8].mxu0 %v9673_v17 }
 0x30d   : > { %8523 = vmatprep.mubr.f32.mxu0 %v9676_v39 }
 0x310   : > { %8524 = vmatmul.mubr.f32.gmra.mrb[10].mxu0 %v4091_v43 }
 0x311   : > { %8526 = vmatprep.mubr.f32.mxu0 %v4101_v44 }
 0x314   : > { %8527 = vmatmul.mubr.f32.gmra.mrb[12].mxu0 %v4111_v48 }
 0x315   : > { %8533 = vmatprep.mubr.f32.mxu0 %v9689_v18 }
 0x318   : > { %8534 = vmatmul.mubr.f32.vlgmr.msra.gmra.mrb[6].mxu0 %v9692_v49 }
 0x319   : > { %8536 = vmatprep.mubr.f32.mxu0 %v9696_v50  ;;  %8920 = vmatpush3.bf16.msra.mxu0 %v9558_v10 }
 0x31a   : > { %8922 = vmatprep.subr.bf16.mxu0 %v9574_v45 }
 0x31c   : > { %8537 = vmatmul.mubr.f32.gmra.mrb[8].mxu0 %v9700_v51 }
 0x31d   : > { %8539 = vmatprep.mubr.f32.mxu0 %v9704_v52 }
 0x320   : > { %8540 = vmatmul.mubr.f32.gmra.mrb[10].mxu0 %v9709_v53 }
 0x321   : > { %8542 = vmatprep.mubr.f32.mxu0 %v9712_v54 }
 0x324   : > { %8543 = vmatmul.mubr.f32.gmra.mrb[12].mxu0 %v9715_v55 }
 0x325   : > { %8549 = vmatprep.mubr.f32.mxu0 %v4043_v56 }
 0x328   : > { %8550 = vmatmul.mubr.f32.vlgmr.msra.gmra.mrb[6].mxu0 %v4053_v57 }
 0x329   : > { %8552 = vmatprep.mubr.f32.mxu0 %v4063_v63  ;;  %8924 = vmatpush3.bf16.msra.mxu0 %v9574_v45  ;;  %v4113_v45 = vand.u32 4294901760, %v9715_v55 }
 0x32a   : > { %8926 = vmatprep.subr.bf16.mxu0 %v9558_v10 }
 0x32c   : > { %8553 = vmatmul.mubr.f32.gmra.mrb[8].mxu0 %v4073_v60 }
 0x32d   : > { %8555 = vmatprep.mubr.f32.mxu0 %v4083_v61 }
 0x330   : > { %8556 = vmatmul.mubr.f32.gmra.mrb[10].mxu0 %v4093_v62 }
 0x331   : > { %8558 = vmatprep.mubr.f32.mxu0 %v4103_v0 }
 0x334   : > { %8559 = vmatmul.mubr.f32.gmra.mrb[12].mxu0 %v4113_v45 }
 0x335   : > { %8565 = vmatprep.mubr.f32.mxu0 %v9647_v29 }
 0x338   : > { %8566 = vmatmul.mubr.f32.vlgmr.msra.gmra.mrb[6].mxu0 %v9657_v33 }
 0x339   : > { %8928 = vmatpush3.bf16.msra.mxu0 %v9558_v10  ;;  %8568 = vmatprep.mubr.f32.mxu0 %v9661_v34 }
 0x33a   : > { %8707 = vmatprep.subr.mxu0 %v9756_v4 }
 0x33c   : > { %8569 = vmatmul.mubr.f32.gmra.mrb[8].mxu0 %v9673_v17 }
 0x33d   : > { %8571 = vmatprep.mubr.f32.mxu0 %v9676_v39 }
 0x340   : > { %8572 = vmatmul.mubr.f32.gmra.mrb[10].mxu0 %v4091_v43 }
 0x341   : > { %8574 = vmatprep.mubr.f32.mxu0 %v4101_v44 }
 0x344   : > { %8575 = vmatmul.mubr.f32.gmra.mrb[12].mxu0 %v4111_v48 }
 0x345   : > { %8581 = vmatprep.mubr.f32.mxu0 %v9647_v29 }
 0x348   : > { %8582 = vmatmul.mubr.f32.vlgmr.msra.gmra.mrb[6].mxu0 %v9657_v33 }
 0x349   : > { %8584 = vmatprep.mubr.f32.mxu0 %v9661_v34  ;;  %8708 = vmatpush3.msra.mxu0 %v9756_v4 }
 0x34c   : > { %8585 = vmatmul.mubr.f32.gmra.mrb[8].mxu0 %v9673_v17 }
 0x34d   : > { %8587 = vmatprep.mubr.f32.mxu0 %v9676_v39 }
 0x350   : > { %8588 = vmatmul.mubr.f32.gmra.mrb[10].mxu0 %v4091_v43 }
 0x351   : > { %8590 = vmatprep.mubr.f32.mxu0 %v4101_v44 }
 0x354   : > { %8591 = vmatmul.mubr.f32.gmra.mrb[12].mxu0 %v4111_v48 }
 0x3a7   : > { %v8466_v8 = vpop.f32.mrb[4].mxu1 }
 0x3a8   : > { %v3426_v9 = vpop.f32.mrb[5].mxu1 }
 0x3d7   : > { %v8424_v11 = vpop.f32.mrb[4].mxu0 }
 0x3d8   : > { %v2912_v12 = vpop.f32.mrb[5].mxu0  ;;  %v2925_v58 = vmul.f32 0.2, %v8424_v11  ;;  %vm2923_vm6 = vcmp.gt.f32.partialorder %v8424_v11, 0.0 }
 0x3d9   : > { %v2924_v13 = vmul.f32 0.2, %v2912_v12  ;;  %vm2922_vm5 = vcmp.gt.f32.partialorder %v2912_v12, 0.0 }
 0x3da   : > { %v2927_v15 = vsel %vm2923_vm6, %v8424_v11, %v2925_v58  ;;  %v4054_v58 = vsub.f32 %v9692_v49, %v4053_v57  ;;  %v4084_v49 = vsub.f32 %v9704_v52, %v4083_v61 }
 0x3db   : > { %v2926_v14 = vsel %vm2922_vm5, %v2912_v12, %v2924_v13  ;;  %v3440_v20 = vsel %vm3436_vm4, %v2927_v15, -inf  ;;  %v4044_v12 = vsub.f32 %v9689_v18, %v4043_v56 }
 0x3dc   : > { %v3437_v24 = vsel %vm3436_vm4, %v2926_v14, -inf  ;;  %v4085_v57 = vand.u32 4294901760, %v4084_v49 }
 0x3dd   : > { %3438 = vmax.xlane.f32.xlu1 %v3437_v24  ;;  %v4045_v13 = vand.u32 4294901760, %v4044_v12  ;;  %v4074_v24 = vsub.f32 %v9700_v51, %v4073_v60  ;;  %v4104_v51 = vsub.f32 %v9712_v54, %v4103_v0 }
 0x3df   : > { %v4075_v56 = vand.u32 4294901760, %v4074_v24  ;;  %v4105_v52 = vand.u32 4294901760, %v4104_v51 }
 0x3e1   : > { %3441 = vmax.xlane.f32.xlu1 %v3440_v20  ;;  %v395_v20 = vld [vmem:[%s10166_s6] sm:$0xff] }
 0x41b   : > { %v9779_v21 = vpop.f32.mrb[6].mxu0 }
 0x41c   : > { %v9781_v27 = vpop.f32.mrb[7].mxu0 }
 0x41f   : > { %v9783_v25 = vpop.f32.mrb[8].mxu0 }
 0x420   : > { %v9785_v28 = vpop.f32.mrb[9].mxu0 }
 0x423   : > { %v9787_v2 = vpop.f32.mrb[10].mxu0 }
 0x424   : > { %v9789_v26 = vpop.f32.mrb[11].mxu0 }
 0x427   : > { %v9791_v29 = vpop.f32.mrb[12].mxu0 }
 0x428   : > { %v9793_v30 = vpop.f32.mrb[13].mxu0 }
 0x46a   : > { %v3439_v31 = vpop.xlane.xlu1 %3438 }
 0x46b   : > { %v3443_v23 = vsub.f32 %v2926_v14, %v3439_v31  ;;  %v4064_v14 = vsub.f32 %v9696_v50, %v4063_v63  ;;  %v4094_v50 = vsub.f32 %v9709_v53, %v4093_v62  ;;  %v4114_v63 = vsub.f32 %v9715_v55, %v4113_v45  ;;  %v396_v45 = vld [vmem:[%s10166_s6 + $0x8] sm:$0xff]  ;;  %v398_v31 = vld [vmem:[%s10166_s6 + $0x18] sm:$0xff] }
 0x46c   : > { %v9862_v53 = vsub.f32 %v9750_v3, %v9756_v4 }
 0x46d   : > { %v3445_v32 = vmul.f32 1.442695, %v3443_v23  ;;  %v4065_v18 = vand.u32 4294901760, %v4064_v14  ;;  %v4115_v60 = vand.u32 4294901760, %v4114_v63 }
 0x46e   : > { %v3442_v33 = vpop.xlane.xlu1 %3441  ;;  %v9865_v61 = vand.u32 4294901760, %v9862_v53 }
 0x46f   : > { %9252 = vpow2.f32 %v3445_v32  ;;  %v3444_v34 = vsub.f32 %v2927_v15, %v3442_v33 }
 0x470   : > { %v5421_v54 = vsub.f32 %v9862_v53, %v9865_v61 }
 0x471   : > { %v3447_v35 = vmul.f32 1.442695, %v3444_v34 }
 0x472   : > { %v9869_v62 = vand.u32 4294901760, %v5421_v54 }
 0x473   : > { %9254 = vpow2.f32 %v3447_v35 }
 0x474   : > { %8712 = vmatprep.subr.mxu0 %v9869_v62 }
 0x479   : > { %v9253_v36 = vpop.eup %9252 }
 0x47a   : > { %v3449_v37 = vmul.f32 %v9253_v36, %v3426_v9 }
 0x47c   : > { %v3452_v38 = vsel %vm3436_vm4, %v3449_v37, 0 }
 0x47d   : > { %v9255_v17 = vpop.eup %9254  ;;  %v9796_v39 = vand.u32 4294901760, %v3452_v38 }
 0x47e   : > { %v3450_v40 = vmul.f32 %v9255_v17, %v8466_v8 }
 0x47f   : > { %v9799_v41 = vsub.f32 %v3452_v38, %v9796_v39 }
 0x480   : > { %v3455_v42 = vsel %vm3436_vm4, %v3450_v40, 0 }
 0x481   : > { %v9802_v43 = vand.u32 4294901760, %v3455_v42  ;;  %v9805_v44 = vand.u32 4294901760, %v9799_v41 }
 0x483   : > { %v9808_v46 = vsub.f32 %v3455_v42, %v9802_v43  ;;  %v3528_v48 = vsub.f32 %v9799_v41, %v9805_v44 }
 0x485   : > { %v3529_v6 = vand.u32 4294901760, %v3528_v48  ;;  %v9813_v9 = vand.u32 4294901760, %v9808_v46 }
 0x487   : > { %8469 = vmatprep.mubr.f32.mxu1 %v3529_v6  ;;  %v3538_v8 = vsub.f32 %v9808_v46, %v9813_v9 }
 0x489   : > { %v9817_v11 = vand.u32 4294901760, %v3538_v8 }
 0x48b   : > { %8470 = vmatmul.mubr.f32.vlgmr.msra.gmra.mrb[6].mxu1 %v9817_v11 }
 0x48c   : > { %8474 = vmatprep.mubr.f32.mxu1 %v9796_v39  ;;  %8473 = vmatpush3.xpose.msra.mxu1 %v3550_v19 }
 0x48d   : > { %8477 = vmatprep.subr.mxu1 %v3547_v59 }
 0x493   : > { %8475 = vmatmul.mubr.f32.vlgmr.msra.gmra.mrb[6].mxu1 %v9802_v43 }
 0x494   : > { %8479 = vmatprep.mubr.f32.mxu1 %v9799_v41  ;;  %8478 = vmatpush3.xpose.msra.mxu1 %v3547_v59 }
 0x495   : > { %8482 = vmatprep.subr.mxu1 %v9772_v7 }
 0x49b   : > { %8480 = vmatmul.mubr.f32.vlgmr.msra.gmra.mrb[6].mxu1 %v9808_v46 }
 0x49c   : > { %8484 = vmatprep.mubr.f32.mxu1 %v9805_v44  ;;  %8483 = vmatpush3.xpose.msra.mxu1 %v9772_v7 }
 0x49d   : > { %8487 = vmatprep.subr.mxu1 %v3548_v22 }
 0x4a3   : > { %8485 = vmatmul.mubr.f32.vlgmr.msra.gmra.mrb[6].mxu1 %v9813_v9 }
 0x4a4   : > { %8489 = vmatprep.mubr.f32.mxu1 %v9796_v39  ;;  %8488 = vmatpush3.xpose.msra.mxu1 %v3548_v22 }
 0x4a5   : > { %8492 = vmatprep.subr.mxu1 %v9772_v7 }
 0x4ab   : > { %8490 = vmatmul.mubr.f32.vlgmr.msra.gmra.mrb[6].mxu1 %v9802_v43 }
 0x4ac   : > { %8493 = vmatpush3.xpose.msra.mxu1 %v9772_v7  ;;  %8494 = vmatprep.mubr.f32.mxu1 %v9796_v39  ;;  %v4055_v7 = vand.u32 4294901760, %v4054_v58 }
 0x4ad   : > { %8906 = vmatprep.subr.bf16.mxu1 %v9558_v10 }
 0x4b3   : > { %8495 = vmatmul.mubr.f32.vlgmr.msra.gmra.mrb[6].mxu1 %v9802_v43 }
 0x4b4   : > { %8908 = vmatpush3.bf16.msra.mxu1 %v9558_v10  ;;  %8501 = vmatprep.mubr.f32.mxu1 %v4045_v13  ;;  %v4095_v10 = vand.u32 4294901760, %v4094_v50  ;;  %v399_v13 = vld [vmem:[%s10166_s6 + $0x20] sm:$0xff] }
 0x4b7   : > { %8502 = vmatmul.mubr.f32.vlgmr.msra.gmra.mrb[8].mxu1 %v4055_v7 }
 0x4b8   : > { %8504 = vmatprep.mubr.f32.mxu1 %v4065_v18 }
 0x4bb   : > { %8505 = vmatmul.mubr.f32.gmra.mrb[10].mxu1 %v4075_v56 }
 0x4bc   : > { %8507 = vmatprep.mubr.f32.mxu1 %v4085_v57 }
 0x4bf   : > { %8508 = vmatmul.mubr.f32.gmra.mrb[12].mxu1 %v4095_v10 }
 0x4c0   : > { %8510 = vmatprep.mubr.f32.mxu1 %v4105_v52  ;;  %v402_v52 = vld [vmem:[%s10166_s6 + $0x38] sm:$0xff] }
 0x4c3   : > { %8511 = vmatmul.mubr.f32.gmra.mrb[14].mxu1 %v4115_v60 }
 0x4c4   : > { %8609 = vmatprep.mubr.f32.mxu1 %v3529_v6  ;;  %v400_v6 = vld [vmem:[%s10166_s6 + $0x28] sm:$0xff] }
 0x586   : > { %v8496_v55 = vpop.f32.mrb[6].mxu1 }
 0x587   : > { %9256 = vrcp.f32 %v8496_v55  ;;  %v3938_v0 = vpop.f32.mrb[7].mxu1 }
 0x588   : > { %9258 = vrcp.f32 %v3938_v0 }
 0x58a   : > { %v8503_v3 = vpop.f32.mrb[8].mxu1 }
 0x58b   : > { %v9025_v15 = vadd.f32 %v9779_v21, %v8503_v3  ;;  %v4047_v59 = vpop.f32.mrb[9].mxu1  ;;  %v397_v21 = vld [vmem:[%s10166_s6 + $0x10] sm:$0xff] }
 0x58c   : > { %v9026_v22 = vadd.f32 %v9781_v27, %v4047_v59 }
 0x58d   : > { %v4735_v16 = vmul.f32 %v9025_v15, %v396_v45  ;;  %v401_v45 = vld [vmem:[%s10166_s6 + $0x30] sm:$0xff] }
 0x58e   : > { %v4734_v19 = vmul.f32 %v9026_v22, %v395_v20  ;;  %v8506_v23 = vpop.f32.mrb[10].mxu1 }
 0x58f   : > { %v4746_v32 = vand.u32 4294901760, %v4735_v16  ;;  %v9027_v33 = vadd.f32 %v9783_v25, %v8506_v23  ;;  %v4067_v34 = vpop.f32.mrb[11].mxu1 }
 0x590   : > { %v4743_v35 = vand.u32 4294901760, %v4734_v19  ;;  %v9028_v36 = vadd.f32 %v9785_v28, %v4067_v34 }
 0x591   : > { %v9257_v37 = vpop.eup %9256  ;;  %v9888_v27 = vsub.f32 %v4735_v16, %v4746_v32  ;;  %v4737_v38 = vmul.f32 %v9027_v33, %v398_v31 }
 0x592   : > { %v9259_v17 = vpop.eup %9258  ;;  %v5326_v40 = vsel %vm1423_vm2, %v9257_v37, 0  ;;  %v9891_v42 = vpack.c.bf16 %v4746_v32, %v4743_v35  ;;  %v9893_v48 = vsub.f32 %v4734_v19, %v4743_v35  ;;  %v4736_v25 = vmul.f32 %v9028_v36, %v397_v21  ;;  %v8509_v8 = vpop.f32.mrb[12].mxu1 }
 0x593   : > { %v9898_v12 = vand.u32 4294901760, %v5326_v40  ;;  %v4752_v28 = vand.u32 4294901760, %v4737_v38  ;;  %v9029_v58 = vadd.f32 %v9787_v2, %v8509_v8  ;;  %v4087_v14 = vpop.f32.mrb[13].mxu1  ;;  %v5323_v7 = vsel %vm1423_vm2, %v9259_v17, 0 }
 0x594   : > { %v4749_v24 = vand.u32 4294901760, %v4736_v25  ;;  %v9030_v18 = vadd.f32 %v9789_v26, %v4087_v14  ;;  %8930 = vmatprep.subr.bf16.mxu1 %v9891_v42  ;;  %v9907_v49 = vand.u32 4294901760, %v5323_v7  ;;  %v4838_v56 = vand.u32 4294901760, %v9893_v48 }
 0x595   : > { %v9911_v50 = vsub.f32 %v5326_v40, %v9898_v12  ;;  %v9913_v2 = vsub.f32 %v4737_v38, %v4752_v28  ;;  %v4739_v57 = vmul.f32 %v9029_v58, %v400_v6  ;;  %8932 = vmatpush3.bf16.msra.mxu1 %v9891_v42  ;;  %v4845_v51 = vand.u32 4294901760, %v9888_v27 }
 0x596   : > { %v9917_v10 = vpack.c.bf16 %v4752_v28, %v4749_v24  ;;  %v9919_v63 = vsub.f32 %v4736_v25, %v4749_v24  ;;  %v4738_v26 = vmul.f32 %v9030_v18, %v399_v13  ;;  %v8512_v60 = vpop.f32.mrb[14].mxu1  ;;  %v9925_v54 = vsub.f32 %v5323_v7, %v9907_v49 }
 0x597   : > { %v4758_v55 = vand.u32 4294901760, %v4739_v57  ;;  %v9031_v0 = vadd.f32 %v9791_v29, %v8512_v60  ;;  %v4107_v3 = vpop.f32.mrb[15].mxu1  ;;  %v5409_v15 = vand.u32 4294901760, %v9911_v50  ;;  %v4839_v20 = vsub.f32 %v9893_v48, %v4838_v56 }
 0x598   : > { %v4755_v59 = vand.u32 4294901760, %v4738_v26  ;;  %v9032_v22 = vadd.f32 %v9793_v30, %v4107_v3  ;;  %8934 = vmatprep.subr.bf16.mxu1 %v9917_v10  ;;  %v5399_v16 = vand.u32 4294901760, %v9925_v54  ;;  %v4846_v29 = vsub.f32 %v9888_v27, %v4845_v51 }
 0x599   : > { %v4872_v19 = vsub.f32 %v4739_v57, %v4758_v55  ;;  %v4741_v31 = vmul.f32 %v9031_v0, %v402_v52  ;;  %8936 = vmatpush3.bf16.msra.mxu1 %v9917_v10  ;;  %v5410_v23 = vsub.f32 %v9911_v50, %v5409_v15  ;;  %v4840_v32 = vand.u32 4294901760, %v4839_v20 }
 0x59a   : > { %v9945_v33 = vpack.c.bf16 %v4758_v55, %v4755_v59  ;;  %v4865_v30 = vsub.f32 %v4738_v26, %v4755_v59  ;;  %v4740_v21 = vmul.f32 %v9032_v22, %v401_v45  ;;  %v5400_v34 = vsub.f32 %v9925_v54, %v5399_v16 }
 0x59b   : > { %v4764_v35 = vand.u32 4294901760, %v4741_v31  ;;  %v5411_v36 = vand.u32 4294901760, %v5410_v23  ;;  %v4847_v37 = vand.u32 4294901760, %v4846_v29  ;;  %v4852_v38 = vand.u32 4294901760, %v9919_v63 }
 0x59c   : > { %v4761_v17 = vand.u32 4294901760, %v4740_v21  ;;  %8938 = vmatprep.subr.bf16.mxu1 %v9945_v33  ;;  %v5401_v40 = vand.u32 4294901760, %v5400_v34  ;;  %v4859_v25 = vand.u32 4294901760, %v9913_v2  ;;  %v4866_v6 = vand.u32 4294901760, %v4865_v30 }
 0x59d   : > { %v4886_v8 = vsub.f32 %v4741_v31, %v4764_v35  ;;  %8940 = vmatpush3.bf16.msra.mxu1 %v9945_v33  ;;  %v8945_v28 = vpack.c.bf16 %v4847_v37, %v4840_v32  ;;  %v4853_v58 = vsub.f32 %v9919_v63, %v4852_v38  ;;  %v4873_v13 = vand.u32 4294901760, %v4872_v19 }
 0x59e   : > { %v9955_v14 = vpack.c.bf16 %v4764_v35, %v4761_v17  ;;  %v4879_v7 = vsub.f32 %v4740_v21, %v4761_v17  ;;  %8709 = vmatprep.mubr.f32.mxu0 %v5401_v40  ;;  %v4860_v24 = vsub.f32 %v9913_v2, %v4859_v25  ;;  %v4867_v18 = vsub.f32 %v4865_v30, %v4866_v6 }
 0x59f   : > { %8710 = vmatmul.mubr.f32.vlgmr.msra.gmra.mrb[14].mxu0 %v5411_v36  ;;  %v4854_v57 = vand.u32 4294901760, %v4853_v58  ;;  %v4874_v26 = vsub.f32 %v4872_v19, %v4873_v13  ;;  %v4887_v52 = vand.u32 4294901760, %v4886_v8  ;;  %v8961_v60 = vpack.c.bf16 %v9888_v27, %v9893_v48 }
 0x5a0   : > { %8942 = vmatprep.subr.bf16.mxu1 %v9955_v14  ;;  %8714 = vmatprep.mubr.f32.mxu0 %v9907_v49  ;;  %v4861_v55 = vand.u32 4294901760, %v4860_v24  ;;  %v4868_v0 = vand.u32 4294901760, %v4867_v18  ;;  %v4880_v45 = vand.u32 4294901760, %v4879_v7  ;;  %v8965_v3 = vpack.c.bf16 %v9913_v2, %v9919_v63 }
 0x5a1   : > { %8944 = vmatpush3.bf16.msra.mxu1 %v9955_v14  ;;  %8713 = vmatpush3.msra.mxu0 %v9869_v62  ;;  %v4875_v20 = vand.u32 4294901760, %v4874_v26  ;;  %v4888_v59 = vsub.f32 %v4886_v8, %v4887_v52  ;;  %v8969_v22 = vpack.c.bf16 %v4872_v19, %v4865_v30  ;;  %v8973_v29 = vpack.c.bf16 %v4886_v8, %v4879_v7 }
 0x5a2   : > { %8946 = vmatprep.subr.bf16.mxu1 %v8945_v28  ;;  %v8949_v31 = vpack.c.bf16 %v4861_v55, %v4854_v57  ;;  %8717 = vmatprep.subr.mxu0 %v9862_v53  ;;  %v4881_v23 = vsub.f32 %v4879_v7, %v4880_v45  ;;  %v8993_v32 = vpack.c.bf16 %v4845_v51, %v4838_v56 }
 0x5a3   : > { %v8953_v21 = vpack.c.bf16 %v4875_v20, %v4868_v0  ;;  %v4889_v2 = vand.u32 4294901760, %v4888_v59  ;;  %v8997_v63 = vpack.c.bf16 %v4859_v25, %v4852_v38  ;;  %v9001_v34 = vpack.c.bf16 %v4873_v13, %v4866_v6 }
 0x5a4   : > { %8610 = vmatmul.mubr.f32.vlgmr.msra.gmra.mrb[16].mxu1 %v9817_v11  ;;  %v4882_v35 = vand.u32 4294901760, %v4881_v23  ;;  %v9005_v36 = vpack.c.bf16 %v4887_v52, %v4880_v45 }
 0x5a5   : > { %8948 = vmatpush3.bf16.msra.mxu1 %v8945_v28  ;;  %8628 = vmatprep.mubr.f32.mxu1 %v9796_v39 }
 0x5a6   : > { %8950 = vmatprep.subr.bf16.mxu1 %v8949_v31  ;;  %v8957_v19 = vpack.c.bf16 %v4889_v2, %v4882_v35 }
 0x5a7   : > { %8715 = vmatmul.mubr.f32.vlgmr.msra.gmra.mrb[14].mxu0 %v9898_v12 }
 0x5a8   : > { %8719 = vmatprep.mubr.f32.mxu0 %v9925_v54  ;;  %8718 = vmatpush3.msra.mxu0 %v9862_v53 }
 0x5a9   : > { %8952 = vmatpush3.bf16.msra.mxu1 %v8949_v31  ;;  %8722 = vmatprep.subr.mxu0 %v9756_v4 }
 0x5aa   : > { %8954 = vmatprep.subr.bf16.mxu1 %v8953_v21 }
 0x5ad   : > { %8956 = vmatpush3.bf16.msra.mxu1 %v8953_v21 }
 0x5ae   : > { %8958 = vmatprep.subr.bf16.mxu1 %v8957_v19 }
 0x5af   : > { %8720 = vmatmul.mubr.f32.vlgmr.msra.gmra.mrb[14].mxu0 %v9911_v50 }
 0x5b0   : > { %8724 = vmatprep.mubr.f32.mxu0 %v5399_v16  ;;  %8723 = vmatpush3.msra.mxu0 %v9756_v4 }
 0x5b1   : > { %8960 = vmatpush3.bf16.msra.mxu1 %v8957_v19  ;;  %8727 = vmatprep.subr.mxu0 %v9865_v61 }
 0x5b2   : > { %8962 = vmatprep.subr.bf16.mxu1 %v8961_v60 }
 0x5b4   : > { %8629 = vmatmul.mubr.f32.vlgmr.msra.gmra.mrb[16].mxu1 %v9802_v43 }
 0x5b5   : > { %8964 = vmatpush3.bf16.msra.mxu1 %v8961_v60  ;;  %8647 = vmatprep.mubr.f32.mxu1 %v9799_v41  ;;  %v10020_v41 = vand.u32 4294901760, %v9741_v1 }
 0x5b6   : > { %8966 = vmatprep.subr.bf16.mxu1 %v8965_v3 }
 0x5b7   : > { %8725 = vmatmul.mubr.f32.vlgmr.msra.gmra.mrb[14].mxu0 %v5409_v15 }
 0x5b8   : > { %8729 = vmatprep.mubr.f32.mxu0 %v9907_v49  ;;  %8728 = vmatpush3.msra.mxu0 %v9865_v61 }
 0x5b9   : > { %8968 = vmatpush3.bf16.msra.mxu1 %v8965_v3  ;;  %8732 = vmatprep.subr.mxu0 %v9756_v4 }
 0x5ba   : > { %8970 = vmatprep.subr.bf16.mxu1 %v8969_v22 }
 0x5bd   : > { %8972 = vmatpush3.bf16.msra.mxu1 %v8969_v22 }
 0x5be   : > { %8974 = vmatprep.subr.bf16.mxu1 %v8973_v29 }
 0x5bf   : > { %8730 = vmatmul.mubr.f32.vlgmr.msra.gmra.mrb[14].mxu0 %v9898_v12 }
 0x5c0   : > { %8734 = vmatprep.mubr.f32.mxu0 %v9907_v49  ;;  %8733 = vmatpush3.msra.mxu0 %v9756_v4 }
 0x5c1   : > { %8976 = vmatpush3.bf16.msra.mxu1 %v8973_v29  ;;  %8767 = vmatprep.subr.mxu0 %v9756_v4 }
 0x5c2   : > { %8978 = vmatprep.subr.bf16.mxu1 %v9891_v42 }
 0x5c4   : > { %8648 = vmatmul.mubr.f32.vlgmr.msra.gmra.mrb[16].mxu1 %v9808_v46 }
 0x5c5   : > { %8980 = vmatpush3.bf16.msra.mxu1 %v9891_v42  ;;  %8666 = vmatprep.mubr.f32.mxu1 %v9805_v44 }
 0x5c6   : > { %8982 = vmatprep.subr.bf16.mxu1 %v9917_v10 }
 0x5c7   : > { %8735 = vmatmul.mubr.f32.vlgmr.msra.gmra.mrb[14].mxu0 %v9898_v12 }
 0x5c8   : > { %8768 = vmatpush3.msra.mxu0 %v9756_v4 }
 0x5c9   : > { %8984 = vmatpush3.bf16.msra.mxu1 %v9917_v10  ;;  %8772 = vmatprep.subr.mxu0 %v9869_v62 }
 0x5ca   : > { %8986 = vmatprep.subr.bf16.mxu1 %v9945_v33 }
 0x5cd   : > { %8988 = vmatpush3.bf16.msra.mxu1 %v9945_v33 }
 0x5ce   : > { %8990 = vmatprep.subr.bf16.mxu1 %v9955_v14 }
 0x5d1   : > { %8992 = vmatpush3.bf16.msra.mxu1 %v9955_v14 }
 0x5d2   : > { %8994 = vmatprep.subr.bf16.mxu1 %v8993_v32 }
 0x5d4   : > { %8667 = vmatmul.mubr.f32.vlgmr.msra.gmra.mrb[16].mxu1 %v9813_v9 }
 0x5d5   : > { %8996 = vmatpush3.bf16.msra.mxu1 %v8993_v32  ;;  %8685 = vmatprep.mubr.f32.mxu1 %v9796_v39 }
 0x5d6   : > { %8998 = vmatprep.subr.bf16.mxu1 %v8997_v63 }
 0x5d9   : > { %9000 = vmatpush3.bf16.msra.mxu1 %v8997_v63 }
 0x5da   : > { %9002 = vmatprep.subr.bf16.mxu1 %v9001_v34 }
 0x5dd   : > { %9004 = vmatpush3.bf16.msra.mxu1 %v9001_v34 }
 0x5de   : > { %9006 = vmatprep.subr.bf16.mxu1 %v9005_v36 }
 0x5e1   : > { %9008 = vmatpush3.bf16.msra.mxu1 %v9005_v36 }
 0x5e2   : > { %9010 = vmatprep.subr.bf16.mxu1 %v9891_v42 }
 0x5e4   : > { %8686 = vmatmul.mubr.f32.vlgmr.msra.gmra.mrb[16].mxu1 %v9802_v43 }
 0x5e5   : > { %9012 = vmatpush3.bf16.msra.mxu1 %v9891_v42  ;;  %8704 = vmatprep.mubr.f32.mxu1 %v9796_v39  ;;  %v10026_v39 = vsub.f32 %v9741_v1, %v10020_v41 }
 0x5e6   : > { %9014 = vmatprep.subr.bf16.mxu1 %v9917_v10 }
 0x5e7   : > { %v10029_v44 = vand.u32 4294901760, %v10026_v39 }
 0x5e9   : > { %9016 = vmatpush3.bf16.msra.mxu1 %v9917_v10  ;;  %v5926_v46 = vsub.f32 %v10026_v39, %v10029_v44 }
 0x5ea   : > { %9018 = vmatprep.subr.bf16.mxu1 %v9945_v33 }
 0x5eb   : > { %v10033_v9 = vand.u32 4294901760, %v5926_v46 }
 0x5ed   : > { %9020 = vmatpush3.bf16.msra.mxu1 %v9945_v33 }
 0x5ee   : > { %9022 = vmatprep.subr.bf16.mxu1 %v9955_v14 }
 0x5f1   : > { %9024 = vmatpush3.bf16.msra.mxu1 %v9955_v14 }
 0x5f2   : > { %8737 = vmatprep.subr.mxu1 %v10020_v41 }
 0x5f4   : > { %8705 = vmatmul.mubr.f32.vlgmr.msra.gmra.mrb[16].mxu1 %v9802_v43 }
 0x5fa   : > { %8738 = vmatpush3.xpose.msra.mxu1 %v10020_v41 }
 0x5fb   : > { %8742 = vmatprep.subr.mxu1 %v10033_v9 }
 0x69a   : > { %v8736_v43 = vpop.f32.mrb[14].mxu0 }
 0x69b   : > { %v5810_v11 = vpop.f32.mrb[15].mxu0 }
 0x6c7   : > { %v8706_v27 = vpop.f32.mrb[16].mxu1 }
 0x6c8   : > { %v5821_v42 = vmul.f32 %v8736_v43, %v8706_v27  ;;  %v5312_v48 = vpop.f32.mrb[17].mxu1 }
 0x6c9   : > { %v5820_v12 = vmul.f32 %v5810_v11, %v5312_v48 }
 0x6ca   : > { %v5823_v49 = vadd.f32 %v5821_v42, %v9578_v47 }
 0x6cb   : > { %v5822_v1 = vadd.f32 %v5820_v12, %v9556_v5 }
 0x6cc   : > { %v5827_v56 = vmin.f32 %v5823_v49, 0.0  ;;  %vm5825_vm7 = vcmp.gt.f32.partialorder %v5823_v49, 0.0 }
 0x6cd   : > { %v5826_v50 = vmin.f32 %v5822_v1, 0.0  ;;  %vm5824_vm8 = vcmp.gt.f32.partialorder %v5822_v1, 0.0 }
 0x6ce   : > { %v5830_v51 = vmul.f32 1.442695, %v5827_v56 }
 0x6cf   : > { %v5828_v10 = vmul.f32 1.442695, %v5826_v50 }
 0x6d0   : > { %9260 = vpow2.f32 %v5830_v51 }
 0x6d1   : > { %9262 = vpow2.f32 %v5828_v10 }
 0x6da   : > { %v9261_v54 = vpop.eup %9260 }
 0x6db   : > { %v9263_v15 = vpop.eup %9262  ;;  %v7948_v16 = vadd.f32 -1.0, %v9261_v54 }
 0x6dc   : > { %v7947_v33 = vadd.f32 -1.0, %v9263_v15 }
 0x6dd   : > { %v10038_v30 = vsel %vm5825_vm7, %v5823_v49, %v7948_v16 }
 0x6de   : > { %v5912_v37 = vand.u32 4294901760, %v10038_v30  ;;  %v10041_v38 = vsel %vm5824_vm8, %v5822_v1, %v7947_v33 }
 0x6df   : > { %v5902_v5 = vand.u32 4294901760, %v10041_v38 }
 0x6e0   : > { %v5913_v47 = vsub.f32 %v10038_v30, %v5912_v37 }
 0x6e1   : > { %v5903_v17 = vsub.f32 %v10041_v38, %v5902_v5 }
 0x6e2   : > { %v5914_v40 = vand.u32 4294901760, %v5913_v47 }
 0x6e3   : > { %v5904_v25 = vand.u32 4294901760, %v5903_v17 }
 0x6e4   : > { %v5915_v6 = vsub.f32 %v5913_v47, %v5914_v40 }
 0x6e5   : > { %v5905_v8 = vsub.f32 %v5903_v17, %v5904_v25 }
 0x6e6   : > { %v5916_v58 = vand.u32 4294901760, %v5915_v6 }
 0x6e7   : > { %v5906_v28 = vand.u32 4294901760, %v5905_v8 }
 0x6e9   : > { %8739 = vmatprep.mubr.f32.mxu1 %v5906_v28 }
 0x6ea   : > { %8740 = vmatmul.mubr.f32.vlgmr.msra.gmra.mrb[18].mxu1 %v5916_v58 }
 0x6eb   : > { %8744 = vmatprep.mubr.f32.mxu1 %v5902_v5  ;;  %8743 = vmatpush3.xpose.msra.mxu1 %v10033_v9 }
 0x6ec   : > { %8747 = vmatprep.subr.mxu1 %v10026_v39 }
 0x6f2   : > { %8745 = vmatmul.mubr.f32.vlgmr.msra.gmra.mrb[18].mxu1 %v5912_v37 }
 0x6f3   : > { %8749 = vmatprep.mubr.f32.mxu1 %v5903_v17  ;;  %8748 = vmatpush3.xpose.msra.mxu1 %v10026_v39 }
 0x6f4   : > { %8752 = vmatprep.subr.mxu1 %v10020_v41 }
 0x6fa   : > { %8750 = vmatmul.mubr.f32.vlgmr.msra.gmra.mrb[18].mxu1 %v5913_v47 }
 0x6fb   : > { %8754 = vmatprep.mubr.f32.mxu1 %v5904_v25  ;;  %8753 = vmatpush3.xpose.msra.mxu1 %v10020_v41 }
 0x6fc   : > { %8757 = vmatprep.subr.mxu1 %v10029_v44 }
 0x702   : > { %8755 = vmatmul.mubr.f32.vlgmr.msra.gmra.mrb[18].mxu1 %v5914_v40 }
 0x703   : > { %8759 = vmatprep.mubr.f32.mxu1 %v5902_v5  ;;  %8758 = vmatpush3.xpose.msra.mxu1 %v10029_v44 }
 0x704   : > { %8762 = vmatprep.subr.mxu1 %v10020_v41 }
 0x70a   : > { %8760 = vmatmul.mubr.f32.vlgmr.msra.gmra.mrb[18].mxu1 %v5912_v37 }
 0x70b   : > { %8764 = vmatprep.mubr.f32.mxu1 %v5902_v5  ;;  %8763 = vmatpush3.xpose.msra.mxu1 %v10020_v41 }
 0x70c   : > { %8797 = vmatprep.subr.mxu1 %v10020_v41 }
 0x712   : > { %8765 = vmatmul.mubr.f32.vlgmr.msra.gmra.mrb[18].mxu1 %v5912_v37 }
 0x713   : > { %8798 = vmatpush3.xpose.msra.mxu1 %v10020_v41 }
 0x714   : > { %8802 = vmatprep.subr.mxu1 %v10033_v9 }
 0x7e5   : > { %v8766_v13 = vpop.f32.mrb[18].mxu1 }
 0x7e6   : > { %v6326_v14 = vmul.f32 0.03125, %v8766_v13  ;;  %v6315_v7 = vpop.f32.mrb[19].mxu1 }
 0x7e7   : > { %v6325_v24 = vmul.f32 0.03125, %v6315_v7 }
 0x7e8   : > { %v6331_v18 = vsel %vm1423_vm2, %v6326_v14, 0 }
 0x7e9   : > { %v6409_v57 = vand.u32 4294901760, %v6331_v18  ;;  %v6328_v26 = vsel %vm1423_vm2, %v6325_v24, 0 }
 0x7ea   : > { %v6399_v52 = vand.u32 4294901760, %v6328_v26 }
 0x7eb   : > { %v6410_v60 = vsub.f32 %v6331_v18, %v6409_v57 }
 0x7ec   : > { %v6400_v55 = vsub.f32 %v6328_v26, %v6399_v52 }
 0x7ed   : > { %v6411_v0 = vand.u32 4294901760, %v6410_v60 }
 0x7ee   : > { %v6401_v45 = vand.u32 4294901760, %v6400_v55 }
 0x7ef   : > { %v6412_v3 = vsub.f32 %v6410_v60, %v6411_v0 }
 0x7f0   : > { %v6402_v20 = vsub.f32 %v6400_v55, %v6401_v45 }
 0x7f1   : > { %v6413_v22 = vand.u32 4294901760, %v6412_v3 }
 0x7f2   : > { %v6403_v59 = vand.u32 4294901760, %v6402_v20 }
 0x7f4   : > { %8769 = vmatprep.mubr.f32.mxu0 %v6403_v59 }
 0x7f5   : > { %8770 = vmatmul.mubr.f32.vlgmr.msra.gmra.mrb[16].mxu0 %v6413_v22 }
 0x7f6   : > { %8774 = vmatprep.mubr.f32.mxu0 %v6399_v52  ;;  %8773 = vmatpush3.msra.mxu0 %v9869_v62 }
 0x7f7   : > { %8777 = vmatprep.subr.mxu0 %v9862_v53 }
 0x7fd   : > { %8775 = vmatmul.mubr.f32.vlgmr.msra.gmra.mrb[16].mxu0 %v6409_v57 }
 0x7fe   : > { %8779 = vmatprep.mubr.f32.mxu0 %v6400_v55  ;;  %8778 = vmatpush3.msra.mxu0 %v9862_v53 }
 0x7ff   : > { %8782 = vmatprep.subr.mxu0 %v9756_v4 }
 0x805   : > { %8780 = vmatmul.mubr.f32.vlgmr.msra.gmra.mrb[16].mxu0 %v6410_v60 }
 0x806   : > { %8784 = vmatprep.mubr.f32.mxu0 %v6401_v45  ;;  %8783 = vmatpush3.msra.mxu0 %v9756_v4 }
 0x807   : > { %8787 = vmatprep.subr.mxu0 %v9865_v61 }
 0x80d   : > { %8785 = vmatmul.mubr.f32.vlgmr.msra.gmra.mrb[16].mxu0 %v6411_v0 }
 0x80e   : > { %8789 = vmatprep.mubr.f32.mxu0 %v6399_v52  ;;  %8788 = vmatpush3.msra.mxu0 %v9865_v61 }
 0x80f   : > { %8792 = vmatprep.subr.mxu0 %v9756_v4 }
 0x815   : > { %8790 = vmatmul.mubr.f32.vlgmr.msra.gmra.mrb[16].mxu0 %v6409_v57 }
 0x816   : > { %8794 = vmatprep.mubr.f32.mxu0 %v6399_v52  ;;  %8793 = vmatpush3.msra.mxu0 %v9756_v4 }
 0x817   : > { %8827 = vmatprep.subr.mxu0 %v9756_v4 }
 0x81d   : > { %8795 = vmatmul.mubr.f32.vlgmr.msra.gmra.mrb[16].mxu0 %v6409_v57 }
 0x81e   : > { %8828 = vmatpush3.msra.mxu0 %v9756_v4 }
 0x81f   : > { %8832 = vmatprep.subr.mxu0 %v9869_v62 }
 0x8f0   : > { %v8796_v29 = vpop.f32.mrb[16].mxu0 }
 0x8f1   : > { %v10073_v31 = vsub.f32 %v10038_v30, %v8796_v29  ;;  %v6812_v23 = vpop.f32.mrb[17].mxu0 }
 0x8f2   : > { %v10076_v32 = vsub.f32 %v10041_v38, %v6812_v23 }
 0x8f3   : > { %v6825_v21 = vmul.f32 %v10073_v31, %v10073_v31 }
 0x8f4   : > { %v6824_v2 = vmul.f32 %v10076_v32, %v10076_v32 }
 0x8f5   : > { %v6902_v63 = vand.u32 4294901760, %v6825_v21 }
 0x8f6   : > { %v6892_v34 = vand.u32 4294901760, %v6824_v2 }
 0x8f7   : > { %v6903_v35 = vsub.f32 %v6825_v21, %v6902_v63 }
 0x8f8   : > { %v6893_v36 = vsub.f32 %v6824_v2, %v6892_v34 }
 0x8f9   : > { %v6904_v19 = vand.u32 4294901760, %v6903_v35 }
 0x8fa   : > { %v6894_v46 = vand.u32 4294901760, %v6893_v36 }
 0x8fb   : > { %v6905_v43 = vsub.f32 %v6903_v35, %v6904_v19 }
 0x8fc   : > { %v6895_v11 = vsub.f32 %v6893_v36, %v6894_v46 }
 0x8fd   : > { %v6906_v42 = vand.u32 4294901760, %v6905_v43 }
 0x8fe   : > { %v6896_v27 = vand.u32 4294901760, %v6895_v11 }
 0x900   : > { %8799 = vmatprep.mubr.f32.mxu1 %v6896_v27 }
 0x901   : > { %8800 = vmatmul.mubr.f32.vlgmr.msra.gmra.mrb[20].mxu1 %v6906_v42 }
 0x902   : > { %8804 = vmatprep.mubr.f32.mxu1 %v6892_v34  ;;  %8803 = vmatpush3.xpose.msra.mxu1 %v10033_v9 }
 0x903   : > { %8807 = vmatprep.subr.mxu1 %v10026_v39 }
 0x909   : > { %8805 = vmatmul.mubr.f32.vlgmr.msra.gmra.mrb[20].mxu1 %v6902_v63 }
 0x90a   : > { %8809 = vmatprep.mubr.f32.mxu1 %v6893_v36  ;;  %8808 = vmatpush3.xpose.msra.mxu1 %v10026_v39 }
 0x90b   : > { %8812 = vmatprep.subr.mxu1 %v10020_v41 }
 0x911   : > { %8810 = vmatmul.mubr.f32.vlgmr.msra.gmra.mrb[20].mxu1 %v6903_v35 }
 0x912   : > { %8814 = vmatprep.mubr.f32.mxu1 %v6894_v46  ;;  %8813 = vmatpush3.xpose.msra.mxu1 %v10020_v41 }
 0x913   : > { %8817 = vmatprep.subr.mxu1 %v10029_v44 }
 0x919   : > { %8815 = vmatmul.mubr.f32.vlgmr.msra.gmra.mrb[20].mxu1 %v6904_v19 }
 0x91a   : > { %8819 = vmatprep.mubr.f32.mxu1 %v6892_v34  ;;  %8818 = vmatpush3.xpose.msra.mxu1 %v10029_v44 }
 0x91b   : > { %8822 = vmatprep.subr.mxu1 %v10020_v41 }
 0x921   : > { %8820 = vmatmul.mubr.f32.vlgmr.msra.gmra.mrb[20].mxu1 %v6902_v63 }
 0x922   : > { %8824 = vmatprep.mubr.f32.mxu1 %v6892_v34  ;;  %8823 = vmatpush3.xpose.msra.mxu1 %v10020_v41 }
 0x929   : > { %8825 = vmatmul.mubr.f32.vlgmr.msra.gmra.mrb[20].mxu1 %v6902_v63 }
 0x9fc   : > { %v8826_v39 = vpop.f32.mrb[20].mxu1 }
 0x9fd   : > { %v7316_v9 = vmul.f32 0.03125, %v8826_v39  ;;  %v7305_v48 = vpop.f32.mrb[21].mxu1 }
 0x9fe   : > { %v7315_v12 = vmul.f32 0.03125, %v7305_v48 }
 0x9ff   : > { %v7318_v49 = vadd.f32 1e-05, %v7316_v9 }
 0xa00   : > { %v7317_v1 = vadd.f32 1e-05, %v7315_v12 }
 0xa01   : > { %9264 = vrsqrt.f32 %v7318_v49 }
 0xa02   : > { %9266 = vrsqrt.f32 %v7317_v1 }
 0xa0b   : > { %v9265_v56 = vpop.eup %9264 }
 0xa0c   : > { %v9267_v50 = vpop.eup %9266  ;;  %v7325_v51 = vsel %vm1423_vm2, %v9265_v56, 0 }
 0xa0d   : > { %v7403_v44 = vand.u32 4294901760, %v7325_v51  ;;  %v7322_v10 = vsel %vm1423_vm2, %v9267_v50, 0 }
 0xa0e   : > { %v7393_v54 = vand.u32 4294901760, %v7322_v10 }
 0xa0f   : > { %v7404_v15 = vsub.f32 %v7325_v51, %v7403_v44 }
 0xa10   : > { %v7394_v16 = vsub.f32 %v7322_v10, %v7393_v54 }
 0xa11   : > { %v7405_v41 = vand.u32 4294901760, %v7404_v15 }
 0xa12   : > { %v7395_v33 = vand.u32 4294901760, %v7394_v16 }
 0xa13   : > { %v7406_v30 = vsub.f32 %v7404_v15, %v7405_v41 }
 0xa14   : > { %v7396_v37 = vsub.f32 %v7394_v16, %v7395_v33 }
 0xa15   : > { %v7407_v5 = vand.u32 4294901760, %v7406_v30 }
 0xa16   : > { %v7397_v38 = vand.u32 4294901760, %v7396_v37 }
 0xa18   : > { %8829 = vmatprep.mubr.f32.mxu0 %v7397_v38 }
 0xa19   : > { %8830 = vmatmul.mubr.f32.vlgmr.msra.gmra.mrb[18].mxu0 %v7407_v5 }
 0xa1a   : > { %8834 = vmatprep.mubr.f32.mxu0 %v7393_v54  ;;  %8833 = vmatpush3.msra.mxu0 %v9869_v62  ;;  %v7949_v62 = vld [vmem:[%s10168_s8] ss:$0 sm:$0xff] }
 0xa1b   : > { %8837 = vmatprep.subr.mxu0 %v9862_v53 }
 0xa21   : > { %8835 = vmatmul.mubr.f32.vlgmr.msra.gmra.mrb[18].mxu0 %v7403_v44 }
 0xa22   : > { %8839 = vmatprep.mubr.f32.mxu0 %v7394_v16  ;;  %8838 = vmatpush3.msra.mxu0 %v9862_v53 }
 0xa23   : > { %8842 = vmatprep.subr.mxu0 %v9756_v4 }
 0xa29   : > { %8840 = vmatmul.mubr.f32.vlgmr.msra.gmra.mrb[18].mxu0 %v7404_v15 }
 0xa2a   : > { %8844 = vmatprep.mubr.f32.mxu0 %v7395_v33  ;;  %8843 = vmatpush3.msra.mxu0 %v9756_v4 }
 0xa2b   : > { %8847 = vmatprep.subr.mxu0 %v9865_v61 }
 0xa31   : > { %8845 = vmatmul.mubr.f32.vlgmr.msra.gmra.mrb[18].mxu0 %v7405_v41 }
 0xa32   : > { %8849 = vmatprep.mubr.f32.mxu0 %v7393_v54  ;;  %8848 = vmatpush3.msra.mxu0 %v9865_v61  ;;  %v7950_v61 = vld [vmem:[%s10169_s9] ss:$0 sm:$0xff] }
 0xa33   : > { %8852 = vmatprep.subr.mxu0 %v9756_v4 }
 0xa39   : > { %8850 = vmatmul.mubr.f32.vlgmr.msra.gmra.mrb[18].mxu0 %v7403_v44 }
 0xa3a   : > { %8854 = vmatprep.mubr.f32.mxu0 %v7393_v54  ;;  %8853 = vmatpush3.msra.mxu0 %v9756_v4 }
 0xa41   : > { %8855 = vmatmul.mubr.f32.vlgmr.msra.gmra.mrb[18].mxu0 %v7403_v44 }
 0xb14   : > { %v8856_v53 = vpop.f32.mrb[18].mxu0 }
 0xb15   : > { %v7817_v47 = vmul.f32 %v8856_v53, %v10073_v31  ;;  %v7806_v17 = vpop.f32.mrb[19].mxu0 }
 0xb16   : > { %v7816_v4 = vmul.f32 %v7806_v17, %v10076_v32 }
 0xb17   : > { %v7826_v40 = vmul.f32 %v7949_v62, %v7817_v47 }
 0xb18   : > { %v7825_v25 = vmul.f32 %v7949_v62, %v7816_v4 }
 0xb19   : > { %v7835_v6 = vadd.f32 %v7950_v61, %v7826_v40 }
 0xb1a   : > { %v7834_v8 = vadd.f32 %v7950_v61, %v7825_v25 }
 0xb1b   : > { %7837 = vst [vmem:[%s367_s18 + $0x8] sm:$0xff] %v7835_v6 }
 0xb1c   : > { %7836 = vst [vmem:[%s367_s18] sm:$0xff] %v7834_v8 }
 0xb1d   : > { %9281 = shalt.err (!%p9278_p3)
}
 0xb1e   : > { %s9282_s26 = scalar_lea.hbm %s10117_s29, 256  ;;  %s9286_s25 = scalar_lea.hbm %s10170_s10, 512 }
 0xb1f   : > { %p9283_p4 = scmp.ne.s32.totalorder %s10117_s29, %s9282_s26  ;;  %p9287_p9 = scmp.lt.u32.totalorder %s10117_s29, %s10170_s10 }
 0xb20   : > { %p9288_p10 = scmp.lt.u32.totalorder %s9286_s25, %s9282_s26  ;;  %p9290_p12 = scmp.lt.u32.totalorder %s9282_s26, %s10117_s29 }
 0xb21   : > { %p9284_p7 = pnand %p9283_p4, %p9432_p5 }
 0xb22   : > { %p9289_p11 = por %p9288_p10, %p9287_p9 }
 0xb23   : > { %p9285_p8 = pneg %p9284_p7 }
 0xb24   : > { %p9291_p13 = por %p9290_p12, %p9289_p11 }
 0xb26   : > { %p9292_p0 = pnand %p9291_p13, %p9285_p8 }
 0xb28   : > { %9295 = shalt.err (!%p9292_p0)
}
 0xb29   : > { %s9337_s30 = smov 128   ;;  %s9338_s11 = smov 8  }
 0xb2a   : > { %9207 = dma.vmem_to_hbm [thread:$0]  (%p9432_p5), %s10112_s20, 256, %s10117_s29, %s10119_s28, %s9337_s30, %s9337_s30, %s9338_s11  }
 0xb2b PF: > { %p9213_p1 = scmp.ge.s32.totalorder %s9330_s16, 2  ;;  %s7867_s12 = sand.u32 1, %s9318_s13  }
 0xb2c   : > { %s7868_s26 = scalar_lea.sflag [#allocation3], %s7867_s12 }
 0xb2d   : > { %p9210_p2 = pnand %p9213_p1, %p9436_p6 }
 0xb2f   : > { %9313 = dma.done.wait (!%p9210_p2), %s7868_s26, 256  }
 0xb30   : > { %9315 = vsyncadd (!%p9210_p2), %s7868_s26, 4294967040  ;;  %p20_p3 = scmp.ge.s32.totalorder %s9419_s19, 4   ;;  %s10173_s13 = smov %s9322_s14 }
 0xb31   : > { %s10174_s14 = smov %s9326_s15  ;;  %s10175_s15 = smov %s9430_s22 }
 0xb32   : > { %s10176_s16 = smov %s9419_s19  ;;  %22 = sbr.rel (!%p20_p3) target bundleno = 3 (0x3), region = 98 }
 0xb39   :  { %7873 = vsyncpa [#allocation3], 1 }
 0xb3a   :  { %7875 = vsyncpa [#allocation3 + $0x1], 1 }

</bundles_post_ra>
